<compile_context>
chip_gen: v7x
topology: tpu7x:2x2x1
jax: 0.10.0
libtpu: 0.0.40
codegen_flags: <defaults>
</compile_context>

<pallas_src>
import math

import jax
import jax.numpy as jnp
from jax.experimental import pallas as pl
from jax.experimental.pallas import tpu as pltpu

# ---------------------------------------------------------------------------
# Config (small synthetic sizes consistent with the module)
# ---------------------------------------------------------------------------
B = 2          # batch
S = 8          # number of crops per sample (softmax / argmax axis)
C = 3          # image channels
H = W = 16     # crop spatial size
PATCH = 4      # synthetic backbone patch size (kernel == stride)
NUM_FEATURES = 64        # backbone num_features
UNI = 32                 # unification_size (d_model), nhead=8 -> head_dim=4
NHEAD = 8
HEAD_DIM = UNI // NHEAD
FF = UNI // 2            # dim_feedforward = feature_size // 2
NLAYERS = 2
LN_EPS = 1e-5

NP = (H // PATCH) * (W // PATCH)   # patches per crop = 16
CP = C * PATCH * PATCH             # patch vector length = 48

LANES = 128


# ---------------------------------------------------------------------------
# Constant-slab layouts (every entry 8-row aligned, lane-padded to 128 so all
# in-kernel slices are tile-aligned prefix loads).
# ---------------------------------------------------------------------------
def _layout(entries):
    lay, row = {}, 0
    for name, shape in entries:
        lay[name] = (row, shape)
        row += ((shape[0] + 7) // 8) * 8
    return lay, row


_W_ENTRIES = [
    ("pool", (S, S * NP)),            # per-crop mean-pool matrix
    ("wb", (CP, NUM_FEATURES)),       # backbone patch-embed weight
    ("wp", (NUM_FEATURES, UNI)),      # fc_proj weight
    ("expand", (NHEAD * S, S)),       # per-head query replication matrix
    ("hmask", (NHEAD * S, UNI)),      # head feature mask
    ("collapse", (S, NHEAD * S)),     # head re-concatenation matrix
]
for _l in range(NLAYERS):
    _W_ENTRIES += [
        (f"inW{_l}", (UNI, 3 * UNI)),
        (f"outW{_l}", (UNI, UNI)),
        (f"l1W{_l}", (UNI, FF)),
        (f"l2W{_l}", (FF, UNI)),
    ]
_W_ENTRIES += [("fc1W", (UNI, FF)), ("fc2W", (1, FF))]
W_LAYOUT, W_ROWS = _layout(_W_ENTRIES)          # (520, 128) bf16

_V_ENTRIES = [("bb", (1, NUM_FEATURES)), ("bp", (1, UNI))]
for _l in range(NLAYERS):
    _V_ENTRIES += [
        (f"inB{_l}", (1, 3 * UNI)), (f"outB{_l}", (1, UNI)),
        (f"n1w{_l}", (1, UNI)), (f"n1b{_l}", (1, UNI)),
        (f"l1b{_l}", (1, FF)), (f"l2b{_l}", (1, UNI)),
        (f"n2w{_l}", (1, UNI)), (f"n2b{_l}", (1, UNI)),
    ]
_V_ENTRIES += [("fc1b", (1, FF)), ("fc2b", (1, 1))]
V_LAYOUT, V_ROWS = _layout(_V_ENTRIES)          # (160, 128) f32


# ---------------------------------------------------------------------------
# Fused kernel: backbone + fc_proj + policy transformer + softmax + pooling.
# One grid step == one batch sample (all S crops handled together).
# ---------------------------------------------------------------------------
def rem_kernel(patches_ref, w_ref, v_ref, out_ref):
    f32, bf16 = jnp.float32, jnp.bfloat16
    scale = 1.0 / math.sqrt(HEAD_DIM)

    def wl(name):                              # bf16 slab slice (static, aligned)
        off, (r, c) = W_LAYOUT[name]
        return w_ref[off:off + r, 0:c]

    def vl(name):                              # f32 slab slice (static, aligned)
        off, (r, c) = V_LAYOUT[name]
        return v_ref[off:off + r, 0:c]

    def bdot(a, b):                            # bf16 MXU matmul, f32 accumulate
        return jnp.dot(a.astype(bf16), b.astype(bf16),
                       preferred_element_type=f32)

    def layernorm(y, wname, bname):
        mu = jnp.mean(y, axis=-1, keepdims=True)
        var = jnp.mean((y - mu) ** 2, axis=-1, keepdims=True)
        return (y - mu) * jax.lax.rsqrt(var + LN_EPS) * vl(wname) + vl(bname)

    # ---- backbone: patch-embed conv as ONE batched matmul over all crops ----
    p = patches_ref[...]                                          # (S*Np, CP)
    fb = jnp.maximum(bdot(p, wl("wb")) + vl("bb"), 0.0)           # (S*Np, NF)
    # per-crop global mean pool as one constant-matrix matmul
    pooled = bdot(wl("pool"), fb)                                 # (S, NF)
    # fc_proj -> the encodings used both by the policy and the final pooling
    enc0 = bdot(pooled, wl("wp")) + vl("bp")                      # (S, UNI)

    expand = wl("expand")                                         # (H*S, S)
    hmask = wl("hmask")                                           # (H*S, UNI)
    collapse = wl("collapse")                                     # (S, H*S)

    x = enc0
    for l in range(NLAYERS):
        # --- multi-head self attention (per-head rows; dropout = identity) ---
        qkv = bdot(x, wl(f"inW{l}")) + vl(f"inB{l}")              # (S, 3*UNI)
        q = qkv[:, :UNI] * scale
        k = qkv[:, UNI:2 * UNI]
        v = qkv[:, 2 * UNI:]

        # replicate q per head on the MXU, zero out non-head features
        qbd = bdot(expand, q) * hmask                             # (H*S, UNI)
        # scores rows = (head, query), cols = keys.  k is the only transposed
        # operand (small (8,32) activation; cannot be pre-transposed host-side).
        scores = jax.lax.dot_general(
            qbd.astype(bf16), k.astype(bf16),
            (((1,), (1,)), ((), ())), preferred_element_type=f32)  # (H*S, S)

        # exact per-(head, query) softmax over the keys
        scores = scores - jnp.max(scores, axis=-1, keepdims=True)
        e = jnp.exp(scores)
        psm = e * pl.reciprocal(jnp.sum(e, axis=-1, keepdims=True), approx=True)

        ctx = bdot(psm, v) * hmask                                # (H*S, UNI)
        attn = bdot(collapse, ctx)                                # (S, UNI) heads concat'd
        attn = bdot(attn, wl(f"outW{l}")) + vl(f"outB{l}")
        x = layernorm(x + attn, f"n1w{l}", f"n1b{l}")

        # --- feed forward (ReLU activation) ---
        ff = jnp.maximum(bdot(x, wl(f"l1W{l}")) + vl(f"l1b{l}"), 0.0)
        ff = bdot(ff, wl(f"l2W{l}")) + vl(f"l2b{l}")
        x = layernorm(x + ff, f"n2w{l}", f"n2b{l}")

    # --- fc_weights head: Dropout(id) -> Linear -> ReLU -> Linear(FF, 1) ---
    h1 = jnp.maximum(bdot(x, wl("fc1W")) + vl("fc1b"), 0.0)       # (S, FF)
    # lane-dense (1, S) logits; h1 is the only transposed operand (activation)
    logits = jax.lax.dot_general(
        wl("fc2W").astype(jnp.bfloat16), h1.astype(jnp.bfloat16),
        (((1,), (1,)), ((), ())), preferred_element_type=f32) + vl("fc2b")

    # softmax over the crop axis (dim=1 of (b, s)), lane-wise.
    # Exact divide kept here (one (1,8) op) so probabilities sum to exactly 1;
    # the approx reciprocal is used only on the attention hot path.
    logits = logits - jnp.max(logits, axis=-1, keepdims=True)
    pe = jnp.exp(logits)
    probs = pe / jnp.sum(pe, axis=-1, keepdims=True)              # (1, S)

    # features = einsum('bsf,bs->bf', encoded_crops, crops_probs)
    # NOTE: uses enc0 (pre-transformer fc_proj encodings) exactly as in the
    # reference module -- the policy transformer only produces the weights.
    feat = bdot(probs, enc0)                                      # (1, UNI)

    # single lane-dense packed output row: [features | probs | zero padding]
    pad = jnp.zeros((1, LANES - UNI - S), f32)
    out_ref[0] = jnp.concatenate([feat, probs, pad], axis=-1)     # (1, 128)


# ---------------------------------------------------------------------------
# Parameter / constant construction (deterministic, synthetic) and slab packing
# ---------------------------------------------------------------------------
def make_params(key):
    ks = iter(jax.random.split(key, 40))

    def w(shape, fan_in):
        return jax.random.normal(next(ks), shape, jnp.float32) / math.sqrt(fan_in)

    def b(shape):
        return 0.01 * jax.random.normal(next(ks), shape, jnp.float32)

    p = {
        "wb": w((CP, NUM_FEATURES), CP),
        "bb": jnp.zeros((1, NUM_FEATURES), jnp.float32),
        "wp": w((NUM_FEATURES, UNI), NUM_FEATURES),
        "bp": b((1, UNI)),
        "fc1W": w((UNI, FF), UNI), "fc1b": b((1, FF)),
        "fc2W": w((1, FF), FF), "fc2b": b((1, 1)),
    }
    for l in range(NLAYERS):
        p.update({
            f"inW{l}": w((UNI, 3 * UNI), UNI), f"inB{l}": b((1, 3 * UNI)),
            f"outW{l}": w((UNI, UNI), UNI), f"outB{l}": b((1, UNI)),
            f"n1w{l}": jnp.ones((1, UNI), jnp.float32),
            f"n1b{l}": jnp.zeros((1, UNI), jnp.float32),
            f"l1W{l}": w((UNI, FF), UNI), f"l1b{l}": b((1, FF)),
            f"l2W{l}": w((FF, UNI), FF), f"l2b{l}": b((1, UNI)),
            f"n2w{l}": jnp.ones((1, UNI), jnp.float32),
            f"n2b{l}": jnp.zeros((1, UNI), jnp.float32),
        })
    return p


def make_consts():
    # constant matrices hoisted out of the kernel (perf feedback #2)
    pr = jnp.arange(S)[:, None]
    pc = jnp.arange(S * NP)[None, :]
    pool = jnp.where(pc // NP == pr, 1.0 / NP, 0.0).astype(jnp.float32)
    expand = jnp.tile(jnp.eye(S, dtype=jnp.float32), (NHEAD, 1))       # (H*S, S)
    hmask = (jnp.arange(NHEAD * S)[:, None] // S
             == jnp.arange(UNI)[None, :] // HEAD_DIM).astype(jnp.float32)
    collapse = jnp.tile(jnp.eye(S, dtype=jnp.float32), (1, NHEAD))     # (S, H*S)
    return {"pool": pool, "expand": expand, "hmask": hmask, "collapse": collapse}


def pack_params(params, consts):
    """Pack weights/constants into one bf16 slab and biases/LN into one f32 slab."""
    wslab = jnp.zeros((W_ROWS, LANES), jnp.bfloat16)
    for name, (off, (r, c)) in W_LAYOUT.items():
        arr = consts[name] if name in consts else params[name]
        wslab = wslab.at[off:off + r, 0:c].set(arr.astype(jnp.bfloat16))
    vslab = jnp.zeros((V_ROWS, LANES), jnp.float32)
    for name, (off, (r, c)) in V_LAYOUT.items():
        vslab = vslab.at[off:off + r, 0:c].set(params[name].astype(jnp.float32))
    return wslab, vslab


# ---------------------------------------------------------------------------
# Forward pass wrapper (single fused pallas_call, grid over batch)
# ---------------------------------------------------------------------------
@jax.jit
def rem_crops_encoder_forward(crops, wslab, vslab):
    b, s, c, h, w = crops.shape
    Hp, Wp = h // PATCH, w // PATCH

    # glue: NCHW -> patchified (b, S*Np, C*P*P); im2col for a conv with
    # kernel == stride == PATCH.  One small XLA transpose; everything else
    # happens inside the fused kernel.
    x = crops.reshape(b, s, c, Hp, PATCH, Wp, PATCH)
    x = x.transpose(0, 1, 3, 5, 2, 4, 6).reshape(b, s * Hp * Wp, c * PATCH * PATCH)

    packed = pl.pallas_call(
        rem_kernel,
        out_shape=jax.ShapeDtypeStruct((b, 1, LANES), jnp.float32),
        grid=(b,),
        in_specs=[
            pl.BlockSpec((pl.Squeezed(), S * NP, CP), lambda i: (i, 0, 0)),
            pl.BlockSpec((W_ROWS, LANES), lambda i: (0, 0)),   # constant block ->
            pl.BlockSpec((V_ROWS, LANES), lambda i: (0, 0)),   # fetched once
        ],
        out_specs=pl.BlockSpec((1, 1, LANES), lambda i: (i, 0, 0)),
        compiler_params=pltpu.CompilerParams(dimension_semantics=("parallel",)),
    )(x, wslab, vslab)

    features = packed[:, 0, :UNI]
    crops_probs = packed[:, 0, UNI:UNI + s]
    # argmax moved out of the kernel (perf feedback #4)
    selected_crops = jnp.argmax(crops_probs, axis=1).astype(jnp.int32)
    return features, crops_probs, selected_crops


# ---------------------------------------------------------------------------
# Pure-JAX reference (same bf16 matmul casts, standard reshape-to-heads
# attention) to validate the masked-block attention / slab packing.
# ---------------------------------------------------------------------------
def reference_forward(crops, params, consts):
    bf16, f32 = jnp.bfloat16, jnp.float32
    scale = 1.0 / math.sqrt(HEAD_DIM)

    def bdot(a, b):
        return jnp.dot(a.astype(bf16), b.astype(bf16), preferred_element_type=f32)

    def ln(y, w, b):
        mu = jnp.mean(y, axis=-1, keepdims=True)
        var = jnp.mean((y - mu) ** 2, axis=-1, keepdims=True)
        return (y - mu) * jax.lax.rsqrt(var + LN_EPS) * w + b

    b_, s_, c_, h_, w_ = crops.shape
    Hp, Wp = h_ // PATCH, w_ // PATCH
    x = crops.reshape(b_, s_, c_, Hp, PATCH, Wp, PATCH)
    x = x.transpose(0, 1, 3, 5, 2, 4, 6).reshape(b_, s_ * Hp * Wp, c_ * PATCH * PATCH)

    feats, probs_all = [], []
    for bi in range(b_):
        fb = jnp.maximum(bdot(x[bi], params["wb"]) + params["bb"], 0.0)
        pooled = bdot(consts["pool"], fb)
        enc0 = bdot(pooled, params["wp"]) + params["bp"]
        y = enc0
        for l in range(NLAYERS):
            qkv = bdot(y, params[f"inW{l}"]) + params[f"inB{l}"]
            q = (qkv[:, :UNI] * scale).reshape(S, NHEAD, HEAD_DIM)
            k = qkv[:, UNI:2 * UNI].reshape(S, NHEAD, HEAD_DIM)
            v = qkv[:, 2 * UNI:].reshape(S, NHEAD, HEAD_DIM)
            sc = jnp.einsum("ihd,jhd->hij", q.astype(bf16), k.astype(bf16),
                            preferred_element_type=f32)
            p = jax.nn.softmax(sc, axis=-1)
            ctx = jnp.einsum("hij,jhd->ihd", p.astype(bf16), v.astype(bf16),
                             preferred_element_type=f32).reshape(S, UNI)
            attn = bdot(ctx, params[f"outW{l}"]) + params[f"outB{l}"]
            y = ln(y + attn, params[f"n1w{l}"], params[f"n1b{l}"])
            ff = jnp.maximum(bdot(y, params[f"l1W{l}"]) + params[f"l1b{l}"], 0.0)
            ff = bdot(ff, params[f"l2W{l}"]) + params[f"l2b{l}"]
            y = ln(y + ff, params[f"n2w{l}"], params[f"n2b{l}"])
        h1 = jnp.maximum(bdot(y, params["fc1W"]) + params["fc1b"], 0.0)
        logits = (bdot(h1, params["fc2W"].T) + params["fc2b"]).reshape(1, S)
        cp = jax.nn.softmax(logits, axis=-1)
        feats.append(bdot(cp, enc0)[0])
        probs_all.append(cp[0])
    return jnp.stack(feats), jnp.stack(probs_all)


# ---------------------------------------------------------------------------
if __name__ == "__main__":
    key = jax.random.PRNGKey(0)
    k_in, k_par = jax.random.split(key)
    crops = jax.random.normal(k_in, (B, S, C, H, W), jnp.float32)
    params = make_params(k_par)
    consts = make_consts()
    wslab, vslab = pack_params(params, consts)

    features, crops_probs, selected = rem_crops_encoder_forward(crops, wslab, vslab)
    jax.block_until_ready((features, crops_probs, selected))

    ref_feat, ref_probs = reference_forward(crops, params, consts)

    assert features.shape == (B, UNI)
    assert crops_probs.shape == (B, S)
    assert selected.shape == (B,)
    assert selected.dtype == jnp.int32
    # softmax rows sum to 1 (exact divide in-kernel)
    assert bool(jnp.allclose(jnp.sum(crops_probs, axis=1), 1.0, atol=1e-5))
    # argmax is valid
    assert bool(jnp.all((selected >= 0) & (selected < S)))
    # features are a convex combination of encodings -> finite
    assert bool(jnp.all(jnp.isfinite(features)))
    # fused kernel matches the straightforward per-head reference
    # (tolerance covers the approx-reciprocal attention softmax + bf16 ordering)
    assert bool(jnp.allclose(crops_probs, ref_probs, atol=2e-2, rtol=2e-2))
    assert bool(jnp.allclose(features, ref_feat, atol=2e-2, rtol=2e-2))

    print("KERNEL_OK")
</pallas_src>

<mosaic_0001>
module attributes {stable_mosaic.version = 11 : i64} {
  func.func @rem_kernel(%arg0: i32, %arg1: memref<1x128x48xf32, #tpu.memory_space<vmem>>, %arg2: memref<520x128xbf16, #tpu.memory_space<vmem>>, %arg3: memref<160x128xf32, #tpu.memory_space<vmem>>, %arg4: memref<1x1x128xf32, #tpu.memory_space<vmem>>) attributes {dimension_semantics = [#tpu.dimension_semantics<parallel>], iteration_bounds = array<i64: 2>, scalar_prefetch = 0 : i64, scratch_operands = 0 : i64, tpu.core_type = #tpu.core_type<tc>, window_params = [{transform_indices = @transform_0, window_bounds = array<i64: 1, 128, 48>}, {pipeline_mode = #tpu.pipeline_mode<synchronous>, transform_indices = @transform_1, window_bounds = array<i64: 520, 128>}, {pipeline_mode = #tpu.pipeline_mode<synchronous>, transform_indices = @transform_2, window_bounds = array<i64: 160, 128>}, {transform_indices = @transform_3, window_bounds = array<i64: 1, 1, 128>}]} {
    %c0 = arith.constant 0 : index
    %c0_0 = arith.constant 0 : index
    %c0_1 = arith.constant 0 : index
    %0 = vector.load %arg1[%c0, %c0_0, %c0_1] : memref<1x128x48xf32, #tpu.memory_space<vmem>>, vector<1x128x48xf32>
    %1 = vector.shape_cast %0 : vector<1x128x48xf32> to vector<128x48xf32>
    %c8 = arith.constant 8 : index
    %c0_2 = arith.constant 0 : index
    %2 = vector.load %arg2[%c8, %c0_2] : memref<520x128xbf16, #tpu.memory_space<vmem>>, vector<48x64xbf16>
    %3 = arith.truncf %1 : vector<128x48xf32> to vector<128x48xbf16>
    %cst = arith.constant dense<0.000000e+00> : vector<128x64xf32>
    %4 = tpu.matmul %3, %2, %cst {dimension_numbers = #tpu.dot_dimension_numbers<[1], [0], [0], [1], [0, 0, 1, 1], [], []>} : vector<128x48xbf16>, vector<48x64xbf16>, vector<128x64xf32> -> vector<128x64xf32>
    %c0_3 = arith.constant 0 : index
    %c0_4 = arith.constant 0 : index
    %5 = vector.load %arg3[%c0_3, %c0_4] : memref<160x128xf32, #tpu.memory_space<vmem>>, vector<1x64xf32>
    %6 = vector.broadcast %5 : vector<1x64xf32> to vector<128x64xf32>
    %7 = arith.addf %4, %6 : vector<128x64xf32>
    %cst_5 = arith.constant 0.000000e+00 : f32
    %8 = vector.broadcast %cst_5 : f32 to vector<128x64xf32>
    %9 = arith.maximumf %7, %8 : vector<128x64xf32>
    %c0_6 = arith.constant 0 : index
    %c0_7 = arith.constant 0 : index
    %10 = vector.load %arg2[%c0_6, %c0_7] : memref<520x128xbf16, #tpu.memory_space<vmem>>, vector<8x128xbf16>
    %11 = arith.truncf %9 : vector<128x64xf32> to vector<128x64xbf16>
    %cst_8 = arith.constant dense<0.000000e+00> : vector<8x64xf32>
    %12 = tpu.matmul %10, %11, %cst_8 {dimension_numbers = #tpu.dot_dimension_numbers<[1], [0], [0], [1], [0, 0, 1, 1], [], []>} : vector<8x128xbf16>, vector<128x64xbf16>, vector<8x64xf32> -> vector<8x64xf32>
    %c56 = arith.constant 56 : index
    %c0_9 = arith.constant 0 : index
    %13 = vector.load %arg2[%c56, %c0_9] : memref<520x128xbf16, #tpu.memory_space<vmem>>, vector<64x32xbf16>
    %14 = arith.truncf %12 : vector<8x64xf32> to vector<8x64xbf16>
    %cst_10 = arith.constant dense<0.000000e+00> : vector<8x32xf32>
    %15 = tpu.matmul %14, %13, %cst_10 {dimension_numbers = #tpu.dot_dimension_numbers<[1], [0], [0], [1], [0, 0, 1, 1], [], []>} : vector<8x64xbf16>, vector<64x32xbf16>, vector<8x32xf32> -> vector<8x32xf32>
    %c8_11 = arith.constant 8 : index
    %c0_12 = arith.constant 0 : index
    %16 = vector.load %arg3[%c8_11, %c0_12] : memref<160x128xf32, #tpu.memory_space<vmem>>, vector<1x32xf32>
    %17 = vector.broadcast %16 : vector<1x32xf32> to vector<8x32xf32>
    %18 = arith.addf %15, %17 : vector<8x32xf32>
    %c120 = arith.constant 120 : index
    %c0_13 = arith.constant 0 : index
    %19 = vector.load %arg2[%c120, %c0_13] : memref<520x128xbf16, #tpu.memory_space<vmem>>, vector<64x8xbf16>
    %c184 = arith.constant 184 : index
    %c0_14 = arith.constant 0 : index
    %20 = vector.load %arg2[%c184, %c0_14] : memref<520x128xbf16, #tpu.memory_space<vmem>>, vector<64x32xbf16>
    %c248 = arith.constant 248 : index
    %c0_15 = arith.constant 0 : index
    %21 = vector.load %arg2[%c248, %c0_15] : memref<520x128xbf16, #tpu.memory_space<vmem>>, vector<8x64xbf16>
    %c256 = arith.constant 256 : index
    %c0_16 = arith.constant 0 : index
    %22 = vector.load %arg2[%c256, %c0_16] : memref<520x128xbf16, #tpu.memory_space<vmem>>, vector<32x96xbf16>
    %23 = arith.truncf %18 : vector<8x32xf32> to vector<8x32xbf16>
    %cst_17 = arith.constant dense<0.000000e+00> : vector<8x96xf32>
    %24 = tpu.matmul %23, %22, %cst_17 {dimension_numbers = #tpu.dot_dimension_numbers<[1], [0], [0], [1], [0, 0, 1, 1], [], []>} : vector<8x32xbf16>, vector<32x96xbf16>, vector<8x96xf32> -> vector<8x96xf32>
    %c16 = arith.constant 16 : index
    %c0_18 = arith.constant 0 : index
    %25 = vector.load %arg3[%c16, %c0_18] : memref<160x128xf32, #tpu.memory_space<vmem>>, vector<1x96xf32>
    %26 = vector.broadcast %25 : vector<1x96xf32> to vector<8x96xf32>
    %27 = arith.addf %24, %26 : vector<8x96xf32>
    %28 = vector.extract_strided_slice %27 {offsets = [0, 0], sizes = [8, 32], strides = [1, 1]} : vector<8x96xf32> to vector<8x32xf32>
    %cst_19 = arith.constant 5.000000e-01 : f32
    %29 = vector.broadcast %cst_19 : f32 to vector<8x32xf32>
    %30 = arith.mulf %28, %29 : vector<8x32xf32>
    %31 = vector.extract_strided_slice %27 {offsets = [0, 32], sizes = [8, 32], strides = [1, 1]} : vector<8x96xf32> to vector<8x32xf32>
    %32 = vector.extract_strided_slice %27 {offsets = [0, 64], sizes = [8, 32], strides = [1, 1]} : vector<8x96xf32> to vector<8x32xf32>
    %33 = arith.truncf %30 : vector<8x32xf32> to vector<8x32xbf16>
    %cst_20 = arith.constant dense<0.000000e+00> : vector<64x32xf32>
    %34 = tpu.matmul %19, %33, %cst_20 {dimension_numbers = #tpu.dot_dimension_numbers<[1], [0], [0], [1], [0, 0, 1, 1], [], []>} : vector<64x8xbf16>, vector<8x32xbf16>, vector<64x32xf32> -> vector<64x32xf32>
    %35 = arith.extf %20 : vector<64x32xbf16> to vector<64x32xf32>
    %36 = arith.mulf %34, %35 : vector<64x32xf32>
    %37 = arith.truncf %36 : vector<64x32xf32> to vector<64x32xbf16>
    %38 = arith.truncf %31 : vector<8x32xf32> to vector<8x32xbf16>
    %cst_21 = arith.constant dense<0.000000e+00> : vector<64x8xf32>
    %39 = tpu.matmul %37, %38, %cst_21 {dimension_numbers = #tpu.dot_dimension_numbers<[1], [1], [0], [0], [0, 0, 1, 0], [], []>} : vector<64x32xbf16>, vector<8x32xbf16>, vector<64x8xf32> -> vector<64x8xf32>
    %cst_22 = arith.constant dense<0xFF800000> : vector<64xf32>
    %40 = vector.multi_reduction <maximumf>, %39, %cst_22 [1] : vector<64x8xf32> to vector<64xf32>
    %41 = vector.shape_cast %40 : vector<64xf32> to vector<64x1xf32>
    %42 = vector.broadcast %41 : vector<64x1xf32> to vector<64x8xf32>
    %43 = arith.subf %39, %42 : vector<64x8xf32>
    %44 = math.exp %43 : vector<64x8xf32>
    %cst_23 = arith.constant dense<0.000000e+00> : vector<64xf32>
    %45 = vector.multi_reduction <add>, %44, %cst_23 [1] : vector<64x8xf32> to vector<64xf32>
    %46 = vector.shape_cast %45 : vector<64xf32> to vector<64x1xf32>
    %47 = tpu.reciprocal %46 {approx = true} : vector<64x1xf32> -> vector<64x1xf32>
    %48 = vector.broadcast %47 : vector<64x1xf32> to vector<64x8xf32>
    %49 = arith.mulf %44, %48 : vector<64x8xf32>
    %50 = arith.truncf %49 : vector<64x8xf32> to vector<64x8xbf16>
    %51 = arith.truncf %32 : vector<8x32xf32> to vector<8x32xbf16>
    %cst_24 = arith.constant dense<0.000000e+00> : vector<64x32xf32>
    %52 = tpu.matmul %50, %51, %cst_24 {dimension_numbers = #tpu.dot_dimension_numbers<[1], [0], [0], [1], [0, 0, 1, 1], [], []>} : vector<64x8xbf16>, vector<8x32xbf16>, vector<64x32xf32> -> vector<64x32xf32>
    %53 = arith.extf %20 : vector<64x32xbf16> to vector<64x32xf32>
    %54 = arith.mulf %52, %53 : vector<64x32xf32>
    %55 = arith.truncf %54 : vector<64x32xf32> to vector<64x32xbf16>
    %cst_25 = arith.constant dense<0.000000e+00> : vector<8x32xf32>
    %56 = tpu.matmul %21, %55, %cst_25 {dimension_numbers = #tpu.dot_dimension_numbers<[1], [0], [0], [1], [0, 0, 1, 1], [], []>} : vector<8x64xbf16>, vector<64x32xbf16>, vector<8x32xf32> -> vector<8x32xf32>
    %c288 = arith.constant 288 : index
    %c0_26 = arith.constant 0 : index
    %57 = vector.load %arg2[%c288, %c0_26] : memref<520x128xbf16, #tpu.memory_space<vmem>>, vector<32x32xbf16>
    %58 = arith.truncf %56 : vector<8x32xf32> to vector<8x32xbf16>
    %cst_27 = arith.constant dense<0.000000e+00> : vector<8x32xf32>
    %59 = tpu.matmul %58, %57, %cst_27 {dimension_numbers = #tpu.dot_dimension_numbers<[1], [0], [0], [1], [0, 0, 1, 1], [], []>} : vector<8x32xbf16>, vector<32x32xbf16>, vector<8x32xf32> -> vector<8x32xf32>
    %c24 = arith.constant 24 : index
    %c0_28 = arith.constant 0 : index
    %60 = vector.load %arg3[%c24, %c0_28] : memref<160x128xf32, #tpu.memory_space<vmem>>, vector<1x32xf32>
    %61 = vector.broadcast %60 : vector<1x32xf32> to vector<8x32xf32>
    %62 = arith.addf %59, %61 : vector<8x32xf32>
    %63 = arith.addf %18, %62 : vector<8x32xf32>
    %cst_29 = arith.constant dense<0.000000e+00> : vector<8xf32>
    %64 = vector.multi_reduction <add>, %63, %cst_29 [1] : vector<8x32xf32> to vector<8xf32>
    %65 = vector.shape_cast %64 : vector<8xf32> to vector<8x1xf32>
    %cst_30 = arith.constant 3.200000e+01 : f32
    %66 = vector.broadcast %cst_30 : f32 to vector<8x1xf32>
    %67 = arith.divf %65, %66 : vector<8x1xf32>
    %68 = vector.broadcast %67 : vector<8x1xf32> to vector<8x32xf32>
    %69 = arith.subf %63, %68 : vector<8x32xf32>
    %70 = arith.mulf %69, %69 : vector<8x32xf32>
    %cst_31 = arith.constant dense<0.000000e+00> : vector<8xf32>
    %71 = vector.multi_reduction <add>, %70, %cst_31 [1] : vector<8x32xf32> to vector<8xf32>
    %72 = vector.shape_cast %71 : vector<8xf32> to vector<8x1xf32>
    %cst_32 = arith.constant 3.200000e+01 : f32
    %73 = vector.broadcast %cst_32 : f32 to vector<8x1xf32>
    %74 = arith.divf %72, %73 : vector<8x1xf32>
    %75 = vector.broadcast %67 : vector<8x1xf32> to vector<8x32xf32>
    %76 = arith.subf %63, %75 : vector<8x32xf32>
    %cst_33 = arith.constant 9.99999974E-6 : f32
    %77 = vector.broadcast %cst_33 : f32 to vector<8x1xf32>
    %78 = arith.addf %74, %77 : vector<8x1xf32>
    %79 = math.rsqrt %78 : vector<8x1xf32>
    %80 = vector.broadcast %79 : vector<8x1xf32> to vector<8x32xf32>
    %81 = arith.mulf %76, %80 : vector<8x32xf32>
    %c32 = arith.constant 32 : index
    %c0_34 = arith.constant 0 : index
    %82 = vector.load %arg3[%c32, %c0_34] : memref<160x128xf32, #tpu.memory_space<vmem>>, vector<1x32xf32>
    %83 = vector.broadcast %82 : vector<1x32xf32> to vector<8x32xf32>
    %84 = arith.mulf %81, %83 : vector<8x32xf32>
    %c40 = arith.constant 40 : index
    %c0_35 = arith.constant 0 : index
    %85 = vector.load %arg3[%c40, %c0_35] : memref<160x128xf32, #tpu.memory_space<vmem>>, vector<1x32xf32>
    %86 = vector.broadcast %85 : vector<1x32xf32> to vector<8x32xf32>
    %87 = arith.addf %84, %86 : vector<8x32xf32>
    %c320 = arith.constant 320 : index
    %c0_36 = arith.constant 0 : index
    %88 = vector.load %arg2[%c320, %c0_36] : memref<520x128xbf16, #tpu.memory_space<vmem>>, vector<32x16xbf16>
    %89 = arith.truncf %87 : vector<8x32xf32> to vector<8x32xbf16>
    %cst_37 = arith.constant dense<0.000000e+00> : vector<8x16xf32>
    %90 = tpu.matmul %89, %88, %cst_37 {dimension_numbers = #tpu.dot_dimension_numbers<[1], [0], [0], [1], [0, 0, 1, 1], [], []>} : vector<8x32xbf16>, vector<32x16xbf16>, vector<8x16xf32> -> vector<8x16xf32>
    %c48 = arith.constant 48 : index
    %c0_38 = arith.constant 0 : index
    %91 = vector.load %arg3[%c48, %c0_38] : memref<160x128xf32, #tpu.memory_space<vmem>>, vector<1x16xf32>
    %92 = vector.broadcast %91 : vector<1x16xf32> to vector<8x16xf32>
    %93 = arith.addf %90, %92 : vector<8x16xf32>
    %cst_39 = arith.constant 0.000000e+00 : f32
    %94 = vector.broadcast %cst_39 : f32 to vector<8x16xf32>
    %95 = arith.maximumf %93, %94 : vector<8x16xf32>
    %c352 = arith.constant 352 : index
    %c0_40 = arith.constant 0 : index
    %96 = vector.load %arg2[%c352, %c0_40] : memref<520x128xbf16, #tpu.memory_space<vmem>>, vector<16x32xbf16>
    %97 = arith.truncf %95 : vector<8x16xf32> to vector<8x16xbf16>
    %cst_41 = arith.constant dense<0.000000e+00> : vector<8x32xf32>
    %98 = tpu.matmul %97, %96, %cst_41 {dimension_numbers = #tpu.dot_dimension_numbers<[1], [0], [0], [1], [0, 0, 1, 1], [], []>} : vector<8x16xbf16>, vector<16x32xbf16>, vector<8x32xf32> -> vector<8x32xf32>
    %c56_42 = arith.constant 56 : index
    %c0_43 = arith.constant 0 : index
    %99 = vector.load %arg3[%c56_42, %c0_43] : memref<160x128xf32, #tpu.memory_space<vmem>>, vector<1x32xf32>
    %100 = vector.broadcast %99 : vector<1x32xf32> to vector<8x32xf32>
    %101 = arith.addf %98, %100 : vector<8x32xf32>
    %102 = arith.addf %87, %101 : vector<8x32xf32>
    %cst_44 = arith.constant dense<0.000000e+00> : vector<8xf32>
    %103 = vector.multi_reduction <add>, %102, %cst_44 [1] : vector<8x32xf32> to vector<8xf32>
    %104 = vector.shape_cast %103 : vector<8xf32> to vector<8x1xf32>
    %cst_45 = arith.constant 3.200000e+01 : f32
    %105 = vector.broadcast %cst_45 : f32 to vector<8x1xf32>
    %106 = arith.divf %104, %105 : vector<8x1xf32>
    %107 = vector.broadcast %106 : vector<8x1xf32> to vector<8x32xf32>
    %108 = arith.subf %102, %107 : vector<8x32xf32>
    %109 = arith.mulf %108, %108 : vector<8x32xf32>
    %cst_46 = arith.constant dense<0.000000e+00> : vector<8xf32>
    %110 = vector.multi_reduction <add>, %109, %cst_46 [1] : vector<8x32xf32> to vector<8xf32>
    %111 = vector.shape_cast %110 : vector<8xf32> to vector<8x1xf32>
    %cst_47 = arith.constant 3.200000e+01 : f32
    %112 = vector.broadcast %cst_47 : f32 to vector<8x1xf32>
    %113 = arith.divf %111, %112 : vector<8x1xf32>
    %114 = vector.broadcast %106 : vector<8x1xf32> to vector<8x32xf32>
    %115 = arith.subf %102, %114 : vector<8x32xf32>
    %cst_48 = arith.constant 9.99999974E-6 : f32
    %116 = vector.broadcast %cst_48 : f32 to vector<8x1xf32>
    %117 = arith.addf %113, %116 : vector<8x1xf32>
    %118 = math.rsqrt %117 : vector<8x1xf32>
    %119 = vector.broadcast %118 : vector<8x1xf32> to vector<8x32xf32>
    %120 = arith.mulf %115, %119 : vector<8x32xf32>
    %c64 = arith.constant 64 : index
    %c0_49 = arith.constant 0 : index
    %121 = vector.load %arg3[%c64, %c0_49] : memref<160x128xf32, #tpu.memory_space<vmem>>, vector<1x32xf32>
    %122 = vector.broadcast %121 : vector<1x32xf32> to vector<8x32xf32>
    %123 = arith.mulf %120, %122 : vector<8x32xf32>
    %c72 = arith.constant 72 : index
    %c0_50 = arith.constant 0 : index
    %124 = vector.load %arg3[%c72, %c0_50] : memref<160x128xf32, #tpu.memory_space<vmem>>, vector<1x32xf32>
    %125 = vector.broadcast %124 : vector<1x32xf32> to vector<8x32xf32>
    %126 = arith.addf %123, %125 : vector<8x32xf32>
    %c368 = arith.constant 368 : index
    %c0_51 = arith.constant 0 : index
    %127 = vector.load %arg2[%c368, %c0_51] : memref<520x128xbf16, #tpu.memory_space<vmem>>, vector<32x96xbf16>
    %128 = arith.truncf %126 : vector<8x32xf32> to vector<8x32xbf16>
    %cst_52 = arith.constant dense<0.000000e+00> : vector<8x96xf32>
    %129 = tpu.matmul %128, %127, %cst_52 {dimension_numbers = #tpu.dot_dimension_numbers<[1], [0], [0], [1], [0, 0, 1, 1], [], []>} : vector<8x32xbf16>, vector<32x96xbf16>, vector<8x96xf32> -> vector<8x96xf32>
    %c80 = arith.constant 80 : index
    %c0_53 = arith.constant 0 : index
    %130 = vector.load %arg3[%c80, %c0_53] : memref<160x128xf32, #tpu.memory_space<vmem>>, vector<1x96xf32>
    %131 = vector.broadcast %130 : vector<1x96xf32> to vector<8x96xf32>
    %132 = arith.addf %129, %131 : vector<8x96xf32>
    %133 = vector.extract_strided_slice %132 {offsets = [0, 0], sizes = [8, 32], strides = [1, 1]} : vector<8x96xf32> to vector<8x32xf32>
    %cst_54 = arith.constant 5.000000e-01 : f32
    %134 = vector.broadcast %cst_54 : f32 to vector<8x32xf32>
    %135 = arith.mulf %133, %134 : vector<8x32xf32>
    %136 = vector.extract_strided_slice %132 {offsets = [0, 32], sizes = [8, 32], strides = [1, 1]} : vector<8x96xf32> to vector<8x32xf32>
    %137 = vector.extract_strided_slice %132 {offsets = [0, 64], sizes = [8, 32], strides = [1, 1]} : vector<8x96xf32> to vector<8x32xf32>
    %138 = arith.truncf %135 : vector<8x32xf32> to vector<8x32xbf16>
    %cst_55 = arith.constant dense<0.000000e+00> : vector<64x32xf32>
    %139 = tpu.matmul %19, %138, %cst_55 {dimension_numbers = #tpu.dot_dimension_numbers<[1], [0], [0], [1], [0, 0, 1, 1], [], []>} : vector<64x8xbf16>, vector<8x32xbf16>, vector<64x32xf32> -> vector<64x32xf32>
    %140 = arith.extf %20 : vector<64x32xbf16> to vector<64x32xf32>
    %141 = arith.mulf %139, %140 : vector<64x32xf32>
    %142 = arith.truncf %141 : vector<64x32xf32> to vector<64x32xbf16>
    %143 = arith.truncf %136 : vector<8x32xf32> to vector<8x32xbf16>
    %cst_56 = arith.constant dense<0.000000e+00> : vector<64x8xf32>
    %144 = tpu.matmul %142, %143, %cst_56 {dimension_numbers = #tpu.dot_dimension_numbers<[1], [1], [0], [0], [0, 0, 1, 0], [], []>} : vector<64x32xbf16>, vector<8x32xbf16>, vector<64x8xf32> -> vector<64x8xf32>
    %cst_57 = arith.constant dense<0xFF800000> : vector<64xf32>
    %145 = vector.multi_reduction <maximumf>, %144, %cst_57 [1] : vector<64x8xf32> to vector<64xf32>
    %146 = vector.shape_cast %145 : vector<64xf32> to vector<64x1xf32>
    %147 = vector.broadcast %146 : vector<64x1xf32> to vector<64x8xf32>
    %148 = arith.subf %144, %147 : vector<64x8xf32>
    %149 = math.exp %148 : vector<64x8xf32>
    %cst_58 = arith.constant dense<0.000000e+00> : vector<64xf32>
    %150 = vector.multi_reduction <add>, %149, %cst_58 [1] : vector<64x8xf32> to vector<64xf32>
    %151 = vector.shape_cast %150 : vector<64xf32> to vector<64x1xf32>
    %152 = tpu.reciprocal %151 {approx = true} : vector<64x1xf32> -> vector<64x1xf32>
    %153 = vector.broadcast %152 : vector<64x1xf32> to vector<64x8xf32>
    %154 = arith.mulf %149, %153 : vector<64x8xf32>
    %155 = arith.truncf %154 : vector<64x8xf32> to vector<64x8xbf16>
    %156 = arith.truncf %137 : vector<8x32xf32> to vector<8x32xbf16>
    %cst_59 = arith.constant dense<0.000000e+00> : vector<64x32xf32>
    %157 = tpu.matmul %155, %156, %cst_59 {dimension_numbers = #tpu.dot_dimension_numbers<[1], [0], [0], [1], [0, 0, 1, 1], [], []>} : vector<64x8xbf16>, vector<8x32xbf16>, vector<64x32xf32> -> vector<64x32xf32>
    %158 = arith.extf %20 : vector<64x32xbf16> to vector<64x32xf32>
    %159 = arith.mulf %157, %158 : vector<64x32xf32>
    %160 = arith.truncf %159 : vector<64x32xf32> to vector<64x32xbf16>
    %cst_60 = arith.constant dense<0.000000e+00> : vector<8x32xf32>
    %161 = tpu.matmul %21, %160, %cst_60 {dimension_numbers = #tpu.dot_dimension_numbers<[1], [0], [0], [1], [0, 0, 1, 1], [], []>} : vector<8x64xbf16>, vector<64x32xbf16>, vector<8x32xf32> -> vector<8x32xf32>
    %c400 = arith.constant 400 : index
    %c0_61 = arith.constant 0 : index
    %162 = vector.load %arg2[%c400, %c0_61] : memref<520x128xbf16, #tpu.memory_space<vmem>>, vector<32x32xbf16>
    %163 = arith.truncf %161 : vector<8x32xf32> to vector<8x32xbf16>
    %cst_62 = arith.constant dense<0.000000e+00> : vector<8x32xf32>
    %164 = tpu.matmul %163, %162, %cst_62 {dimension_numbers = #tpu.dot_dimension_numbers<[1], [0], [0], [1], [0, 0, 1, 1], [], []>} : vector<8x32xbf16>, vector<32x32xbf16>, vector<8x32xf32> -> vector<8x32xf32>
    %c88 = arith.constant 88 : index
    %c0_63 = arith.constant 0 : index
    %165 = vector.load %arg3[%c88, %c0_63] : memref<160x128xf32, #tpu.memory_space<vmem>>, vector<1x32xf32>
    %166 = vector.broadcast %165 : vector<1x32xf32> to vector<8x32xf32>
    %167 = arith.addf %164, %166 : vector<8x32xf32>
    %168 = arith.addf %126, %167 : vector<8x32xf32>
    %cst_64 = arith.constant dense<0.000000e+00> : vector<8xf32>
    %169 = vector.multi_reduction <add>, %168, %cst_64 [1] : vector<8x32xf32> to vector<8xf32>
    %170 = vector.shape_cast %169 : vector<8xf32> to vector<8x1xf32>
    %cst_65 = arith.constant 3.200000e+01 : f32
    %171 = vector.broadcast %cst_65 : f32 to vector<8x1xf32>
    %172 = arith.divf %170, %171 : vector<8x1xf32>
    %173 = vector.broadcast %172 : vector<8x1xf32> to vector<8x32xf32>
    %174 = arith.subf %168, %173 : vector<8x32xf32>
    %175 = arith.mulf %174, %174 : vector<8x32xf32>
    %cst_66 = arith.constant dense<0.000000e+00> : vector<8xf32>
    %176 = vector.multi_reduction <add>, %175, %cst_66 [1] : vector<8x32xf32> to vector<8xf32>
    %177 = vector.shape_cast %176 : vector<8xf32> to vector<8x1xf32>
    %cst_67 = arith.constant 3.200000e+01 : f32
    %178 = vector.broadcast %cst_67 : f32 to vector<8x1xf32>
    %179 = arith.divf %177, %178 : vector<8x1xf32>
    %180 = vector.broadcast %172 : vector<8x1xf32> to vector<8x32xf32>
    %181 = arith.subf %168, %180 : vector<8x32xf32>
    %cst_68 = arith.constant 9.99999974E-6 : f32
    %182 = vector.broadcast %cst_68 : f32 to vector<8x1xf32>
    %183 = arith.addf %179, %182 : vector<8x1xf32>
    %184 = math.rsqrt %183 : vector<8x1xf32>
    %185 = vector.broadcast %184 : vector<8x1xf32> to vector<8x32xf32>
    %186 = arith.mulf %181, %185 : vector<8x32xf32>
    %c96 = arith.constant 96 : index
    %c0_69 = arith.constant 0 : index
    %187 = vector.load %arg3[%c96, %c0_69] : memref<160x128xf32, #tpu.memory_space<vmem>>, vector<1x32xf32>
    %188 = vector.broadcast %187 : vector<1x32xf32> to vector<8x32xf32>
    %189 = arith.mulf %186, %188 : vector<8x32xf32>
    %c104 = arith.constant 104 : index
    %c0_70 = arith.constant 0 : index
    %190 = vector.load %arg3[%c104, %c0_70] : memref<160x128xf32, #tpu.memory_space<vmem>>, vector<1x32xf32>
    %191 = vector.broadcast %190 : vector<1x32xf32> to vector<8x32xf32>
    %192 = arith.addf %189, %191 : vector<8x32xf32>
    %c432 = arith.constant 432 : index
    %c0_71 = arith.constant 0 : index
    %193 = vector.load %arg2[%c432, %c0_71] : memref<520x128xbf16, #tpu.memory_space<vmem>>, vector<32x16xbf16>
    %194 = arith.truncf %192 : vector<8x32xf32> to vector<8x32xbf16>
    %cst_72 = arith.constant dense<0.000000e+00> : vector<8x16xf32>
    %195 = tpu.matmul %194, %193, %cst_72 {dimension_numbers = #tpu.dot_dimension_numbers<[1], [0], [0], [1], [0, 0, 1, 1], [], []>} : vector<8x32xbf16>, vector<32x16xbf16>, vector<8x16xf32> -> vector<8x16xf32>
    %c112 = arith.constant 112 : index
    %c0_73 = arith.constant 0 : index
    %196 = vector.load %arg3[%c112, %c0_73] : memref<160x128xf32, #tpu.memory_space<vmem>>, vector<1x16xf32>
    %197 = vector.broadcast %196 : vector<1x16xf32> to vector<8x16xf32>
    %198 = arith.addf %195, %197 : vector<8x16xf32>
    %cst_74 = arith.constant 0.000000e+00 : f32
    %199 = vector.broadcast %cst_74 : f32 to vector<8x16xf32>
    %200 = arith.maximumf %198, %199 : vector<8x16xf32>
    %c464 = arith.constant 464 : index
    %c0_75 = arith.constant 0 : index
    %201 = vector.load %arg2[%c464, %c0_75] : memref<520x128xbf16, #tpu.memory_space<vmem>>, vector<16x32xbf16>
    %202 = arith.truncf %200 : vector<8x16xf32> to vector<8x16xbf16>
    %cst_76 = arith.constant dense<0.000000e+00> : vector<8x32xf32>
    %203 = tpu.matmul %202, %201, %cst_76 {dimension_numbers = #tpu.dot_dimension_numbers<[1], [0], [0], [1], [0, 0, 1, 1], [], []>} : vector<8x16xbf16>, vector<16x32xbf16>, vector<8x32xf32> -> vector<8x32xf32>
    %c120_77 = arith.constant 120 : index
    %c0_78 = arith.constant 0 : index
    %204 = vector.load %arg3[%c120_77, %c0_78] : memref<160x128xf32, #tpu.memory_space<vmem>>, vector<1x32xf32>
    %205 = vector.broadcast %204 : vector<1x32xf32> to vector<8x32xf32>
    %206 = arith.addf %203, %205 : vector<8x32xf32>
    %207 = arith.addf %192, %206 : vector<8x32xf32>
    %cst_79 = arith.constant dense<0.000000e+00> : vector<8xf32>
    %208 = vector.multi_reduction <add>, %207, %cst_79 [1] : vector<8x32xf32> to vector<8xf32>
    %209 = vector.shape_cast %208 : vector<8xf32> to vector<8x1xf32>
    %cst_80 = arith.constant 3.200000e+01 : f32
    %210 = vector.broadcast %cst_80 : f32 to vector<8x1xf32>
    %211 = arith.divf %209, %210 : vector<8x1xf32>
    %212 = vector.broadcast %211 : vector<8x1xf32> to vector<8x32xf32>
    %213 = arith.subf %207, %212 : vector<8x32xf32>
    %214 = arith.mulf %213, %213 : vector<8x32xf32>
    %cst_81 = arith.constant dense<0.000000e+00> : vector<8xf32>
    %215 = vector.multi_reduction <add>, %214, %cst_81 [1] : vector<8x32xf32> to vector<8xf32>
    %216 = vector.shape_cast %215 : vector<8xf32> to vector<8x1xf32>
    %cst_82 = arith.constant 3.200000e+01 : f32
    %217 = vector.broadcast %cst_82 : f32 to vector<8x1xf32>
    %218 = arith.divf %216, %217 : vector<8x1xf32>
    %219 = vector.broadcast %211 : vector<8x1xf32> to vector<8x32xf32>
    %220 = arith.subf %207, %219 : vector<8x32xf32>
    %cst_83 = arith.constant 9.99999974E-6 : f32
    %221 = vector.broadcast %cst_83 : f32 to vector<8x1xf32>
    %222 = arith.addf %218, %221 : vector<8x1xf32>
    %223 = math.rsqrt %222 : vector<8x1xf32>
    %224 = vector.broadcast %223 : vector<8x1xf32> to vector<8x32xf32>
    %225 = arith.mulf %220, %224 : vector<8x32xf32>
    %c128 = arith.constant 128 : index
    %c0_84 = arith.constant 0 : index
    %226 = vector.load %arg3[%c128, %c0_84] : memref<160x128xf32, #tpu.memory_space<vmem>>, vector<1x32xf32>
    %227 = vector.broadcast %226 : vector<1x32xf32> to vector<8x32xf32>
    %228 = arith.mulf %225, %227 : vector<8x32xf32>
    %c136 = arith.constant 136 : index
    %c0_85 = arith.constant 0 : index
    %229 = vector.load %arg3[%c136, %c0_85] : memref<160x128xf32, #tpu.memory_space<vmem>>, vector<1x32xf32>
    %230 = vector.broadcast %229 : vector<1x32xf32> to vector<8x32xf32>
    %231 = arith.addf %228, %230 : vector<8x32xf32>
    %c480 = arith.constant 480 : index
    %c0_86 = arith.constant 0 : index
    %232 = vector.load %arg2[%c480, %c0_86] : memref<520x128xbf16, #tpu.memory_space<vmem>>, vector<32x16xbf16>
    %233 = arith.truncf %231 : vector<8x32xf32> to vector<8x32xbf16>
    %cst_87 = arith.constant dense<0.000000e+00> : vector<8x16xf32>
    %234 = tpu.matmul %233, %232, %cst_87 {dimension_numbers = #tpu.dot_dimension_numbers<[1], [0], [0], [1], [0, 0, 1, 1], [], []>} : vector<8x32xbf16>, vector<32x16xbf16>, vector<8x16xf32> -> vector<8x16xf32>
    %c144 = arith.constant 144 : index
    %c0_88 = arith.constant 0 : index
    %235 = vector.load %arg3[%c144, %c0_88] : memref<160x128xf32, #tpu.memory_space<vmem>>, vector<1x16xf32>
    %236 = vector.broadcast %235 : vector<1x16xf32> to vector<8x16xf32>
    %237 = arith.addf %234, %236 : vector<8x16xf32>
    %cst_89 = arith.constant 0.000000e+00 : f32
    %238 = vector.broadcast %cst_89 : f32 to vector<8x16xf32>
    %239 = arith.maximumf %237, %238 : vector<8x16xf32>
    %c512 = arith.constant 512 : index
    %c0_90 = arith.constant 0 : index
    %240 = vector.load %arg2[%c512, %c0_90] : memref<520x128xbf16, #tpu.memory_space<vmem>>, vector<1x16xbf16>
    %241 = arith.truncf %239 : vector<8x16xf32> to vector<8x16xbf16>
    %cst_91 = arith.constant dense<0.000000e+00> : vector<1x8xf32>
    %242 = tpu.matmul %240, %241, %cst_91 {dimension_numbers = #tpu.dot_dimension_numbers<[1], [1], [0], [0], [0, 0, 1, 0], [], []>} : vector<1x16xbf16>, vector<8x16xbf16>, vector<1x8xf32> -> vector<1x8xf32>
    %c152 = arith.constant 152 : index
    %c0_92 = arith.constant 0 : index
    %243 = vector.load %arg3[%c152, %c0_92] : memref<160x128xf32, #tpu.memory_space<vmem>>, vector<1x1xf32>
    %244 = vector.broadcast %243 : vector<1x1xf32> to vector<1x8xf32>
    %245 = arith.addf %242, %244 : vector<1x8xf32>
    %cst_93 = arith.constant dense<0xFF800000> : vector<1xf32>
    %246 = vector.multi_reduction <maximumf>, %245, %cst_93 [1] : vector<1x8xf32> to vector<1xf32>
    %247 = vector.shape_cast %246 : vector<1xf32> to vector<1x1xf32>
    %248 = vector.broadcast %247 : vector<1x1xf32> to vector<1x8xf32>
    %249 = arith.subf %245, %248 : vector<1x8xf32>
    %250 = math.exp %249 : vector<1x8xf32>
    %cst_94 = arith.constant dense<0.000000e+00> : vector<1xf32>
    %251 = vector.multi_reduction <add>, %250, %cst_94 [1] : vector<1x8xf32> to vector<1xf32>
    %252 = vector.shape_cast %251 : vector<1xf32> to vector<1x1xf32>
    %253 = vector.broadcast %252 : vector<1x1xf32> to vector<1x8xf32>
    %254 = arith.divf %250, %253 : vector<1x8xf32>
    %255 = arith.truncf %254 : vector<1x8xf32> to vector<1x8xbf16>
    %256 = arith.truncf %18 : vector<8x32xf32> to vector<8x32xbf16>
    %cst_95 = arith.constant dense<0.000000e+00> : vector<1x32xf32>
    %257 = tpu.matmul %255, %256, %cst_95 {dimension_numbers = #tpu.dot_dimension_numbers<[1], [0], [0], [1], [0, 0, 1, 1], [], []>} : vector<1x8xbf16>, vector<8x32xbf16>, vector<1x32xf32> -> vector<1x32xf32>
    %cst_96 = arith.constant 0.000000e+00 : f32
    %258 = vector.broadcast %cst_96 : f32 to vector<1x88xf32>
    %259 = tpu.concatenate %257, %254, %258 in 1 : vector<1x32xf32>, vector<1x8xf32>, vector<1x88xf32> -> vector<1x128xf32>
    %c0_97 = arith.constant 0 : index
    %c0_98 = arith.constant 0 : index
    %c0_99 = arith.constant 0 : index
    %260 = vector.load %arg4[%c0_97, %c0_98, %c0_99] : memref<1x1x128xf32, #tpu.memory_space<vmem>>, vector<1x1x128xf32>
    %261 = vector.shape_cast %260 : vector<1x1x128xf32> to vector<1x128xf32>
    %262 = vector.shape_cast %259 : vector<1x128xf32> to vector<1x1x128xf32>
    tpu.vector_store %arg4[%c0_97, %c0_98, %c0_99], %262 {strides = array<i32>} : memref<1x1x128xf32, #tpu.memory_space<vmem>>, vector<1x1x128xf32>,
    return
  }
  func.func @transform_0(%arg0: i32) -> (i32, i32, i32) {
    %c0_i32 = arith.constant 0 : i32
    %c0_i32_0 = arith.constant 0 : i32
    %c0_i32_1 = arith.constant 0 : i32
    return %arg0, %c0_i32, %c0_i32_0 : i32, i32, i32
  }
  func.func @transform_1(%arg0: i32) -> (i32, i32) {
    %c0_i32 = arith.constant 0 : i32
    %c0_i32_0 = arith.constant 0 : i32
    %c0_i32_1 = arith.constant 0 : i32
    return %c0_i32, %c0_i32_0 : i32, i32
  }
  func.func @transform_2(%arg0: i32) -> (i32, i32) {
    %c0_i32 = arith.constant 0 : i32
    %c0_i32_0 = arith.constant 0 : i32
    %c0_i32_1 = arith.constant 0 : i32
    return %c0_i32, %c0_i32_0 : i32, i32
  }
  func.func @transform_3(%arg0: i32) -> (i32, i32, i32) {
    %c0_i32 = arith.constant 0 : i32
    %c0_i32_0 = arith.constant 0 : i32
    %c0_i32_1 = arith.constant 0 : i32
    return %arg0, %c0_i32, %c0_i32_0 : i32, i32, i32
  }
}

</mosaic_0001>

<bundles_post_ra>
// kernel: rem_crops_encoder_forward.1
= control target key start
LH: loop header
LB: loop body
LE: loop exit
PB: predicated region body
PF: predicated region fallthrough
CT: control target
= control target key end

     0   :  { %s2770_s12 = smov 0   ;;  %s3238_s0 = inlined_call_operand.vmem [shape: f32[2,128,48], index: 0, kind: input, shape index: {}]   ;;  %s3239_s1 = inlined_call_operand.vmem [shape: bf16[520,128], index: 1, kind: input, shape index: {}]   ;;  %s3240_s2 = inlined_call_operand.vmem [shape: f32[160,128], index: 2, kind: input, shape index: {}]   ;;  %s3241_s3 = inlined_call_operand.vmem [shape: f32[2,1,128], index: 3, kind: output, shape index: {}]  }
   0x1 LB: > { %s2182_s13 = sadd.s32 4294967295, %s2742_s12   ;;  %p2186_p0 = scmp.ge.s32.totalorder %s2742_s12, 1  ;;  %s2742_s12 = sphi %s2770_s12, %s13_s12  }
   0x2   : > { %p137_p1 = scmp.lt.s32.totalorder %s2742_s12, 3 }
   0x4   : > { %p138_p2 = pnand %p2186_p0, %p137_p1 }
   0x5   : > { %v2633_v0 = vld [vmem:[%s3239_s1 + $0x4] sm:$0xff] (!%p138_p2)   ;;  %p159_p3 = scmp.lt.s32.totalorder (!%p138_p2), %s2182_s13, 1  ;;  %v2634_v1 = vld [vmem:[%s3239_s1 + $0xc] sm:$0xff] (!%p138_p2)   ;;  %v2635_v2 = vld [vmem:[%s3239_s1 + $0x14] sm:$0xff] (!%p138_p2)   ;;  %vm221_vm0 = vcmask (!%p138_p2), 392192   ;;  %v2744_v27 = vmov (!%p138_p2), 0.0  }
   0x6   : > { %141 = sbr.rel (%p138_p2) target bundleno = 7103 (0x1bbf), region = 32  ;;  %2393 = vmatprep.subr.bf16.mxu0 (!%p138_p2), %v2633_v0  ;;  %2415 = vmatprep.subr.bf16.mxu1 (!%p138_p2), %v2744_v27  ;;  %vm2745_vm1 = vmmov (!%p138_p2), 0   ;;  %v2636_v28 = vld [vmem:[%s3239_s1 + $0x1c] sm:$0xff] (!%p138_p2)   ;;  %v2637_v29 = vld [vmem:[%s3239_s1 + $0x24] sm:$0xff] (!%p138_p2)   ;;  %v2638_v30 = vld [vmem:[%s3239_s1 + $0x2c] sm:$0xff] (!%p138_p2)   ;;  %vm446_vm2 = vcmask (!%p138_p2), 523264  }
   0x7   : > { %2394 = vmatpush3.bf16.msra.mxu0 (!%p138_p2), %v2633_v0  ;;  %2431 = vmatprep.mubr.msk.bf16.mxu1 (!%p138_p2), %vm2745_vm1, %v2744_v27  ;;  %v2189_v31 = vld [vmem:[%s3240_s2] ss:$0 sm:$0xff] (!%p138_p2)  ;;  %vm529_vm3 = vcmask (!%p138_p2), 261120   ;;  %vm595_vm4 = vcmask (!%p138_p2), 64512   ;;  %s2746_s21 = smov (!%p138_p2), 96   ;;  %vm608_vm5 = vcmask (!%p138_p2), 1043456  }
   0x8   : > { %2395 = vmatprep.subr.bf16.mxu0 (!%p138_p2), %v2634_v1  ;;  %s2747_s9 = smov (!%p138_p2), 64   ;;  %vm1182_vm6 = vcmask (!%p138_p2), 130048   ;;  %vm2069_vm7 = vcmask (!%p138_p2), 57344   ;;  %s2749_s29 = smov (!%p138_p2), 32   ;;  %vm2132_vm8 = vcmask (!%p138_p2), 326656  }
   0xb   : > { %2396 = vmatpush3.bf16.msra.mxu0 (!%p138_p2), %v2634_v1 }
   0xc   : > { %2397 = vmatprep.subr.bf16.mxu0 (!%p138_p2), %v2635_v2 }
   0xd   : > { %s3243_s13 = smov (!%p159_p3, %s2182_s13), 1 }
   0xe   : > { %s2283_s20 = sshll.u32 %s3243_s13, 7  ;;  %s166_s5 = scalar_lea.vmem %s3241_s3, %s3243_s13 }
   0xf   : > { %s2793_s23 = scalar_lea.vmem %s3238_s0, %s2283_s20  ;;  %2398 = vmatpush3.bf16.msra.mxu0 %v2635_v2 }
  0x10   : > { %v168_v3 = vld [vmem:[%s2793_s23] sm:$0xff]  ;;  %v169_v4 = vld [vmem:[%s2793_s23 + $0x8] sm:$0xff]  ;;  %v170_v6 = vld [vmem:[%s2793_s23 + $0x10] sm:$0xff]  ;;  %2435 = vmatprep.subr.bf16.mxu0 %v2744_v27 }
  0x11   : > { %v190_v5 = vpack.c.bf16 %v169_v4, %v168_v3  ;;  %v171_v7 = vld [vmem:[%s2793_s23 + $0x18] sm:$0xff]  ;;  %v172_v8 = vld [vmem:[%s2793_s23 + $0x20] sm:$0xff]  ;;  %v173_v9 = vld [vmem:[%s2793_s23 + $0x28] sm:$0xff] }
  0x12   : > { %v191_v10 = vpack.c.bf16 %v171_v7, %v170_v6  ;;  %v192_v11 = vpack.c.bf16 %v173_v9, %v172_v8  ;;  %v174_v12 = vld [vmem:[%s2793_s23 + $0x30] sm:$0xff]  ;;  %v175_v13 = vld [vmem:[%s2793_s23 + $0x38] sm:$0xff]  ;;  %v176_v14 = vld [vmem:[%s2793_s23 + $0x40] sm:$0xff] }
  0x13   : > { %2399 = vmatprep.mubr.msk.bf16.mxu0 %vm221_vm0, %v190_v5  ;;  %v177_v15 = vld [vmem:[%s2793_s23 + $0x48] sm:$0xff]  ;;  %v193_v16 = vpack.c.bf16 %v175_v13, %v174_v12  ;;  %v178_v18 = vld [vmem:[%s2793_s23 + $0x50] sm:$0xff]  ;;  %v179_v19 = vld [vmem:[%s2793_s23 + $0x58] sm:$0xff] }
  0x14   : > { %2400 = vmatmul.mubr.msk.bf16.vlgmr.msra.gmra.mrb[0].mxu0 %vm221_vm0, %v191_v10  ;;  %v194_v17 = vpack.c.bf16 %v177_v15, %v176_v14  ;;  %v180_v20 = vld [vmem:[%s2793_s23 + $0x60] sm:$0xff]  ;;  %v181_v21 = vld [vmem:[%s2793_s23 + $0x68] sm:$0xff]  ;;  %v195_v22 = vpack.c.bf16 %v179_v19, %v178_v18  ;;  %v182_v24 = vld [vmem:[%s2793_s23 + $0x70] sm:$0xff] }
  0x15   : > { %2403 = vmatprep.mubr.msk.bf16.mxu0 %vm221_vm0, %v192_v11  ;;  %v196_v23 = vpack.c.bf16 %v181_v21, %v180_v20  ;;  %v183_v25 = vld [vmem:[%s2793_s23 + $0x78] sm:$0xff]  ;;  %2436 = vmatpush3.bf16.msra.mxu0 %v2636_v28 }
  0x16   : > { %v197_v26 = vpack.c.bf16 %v183_v25, %v182_v24  ;;  %2437 = vmatprep.subr.bf16.mxu0 %v2744_v27  ;;  %v359_v24 = vld [vmem:[%s3239_s1] sm:$0xf]  ;;  %v2639_v25 = vld [vmem:[%s3239_s1 + $0x34] sm:$0xff]  }
  0x19   : > { %2438 = vmatpush3.bf16.msra.mxu0 %v2637_v29 }
  0x1a   : > { %2439 = vmatprep.subr.bf16.mxu0 %v2744_v27 }
  0x1c   : > { %2404 = vmatmul.mubr.msk.bf16.gmra.mrb[4].mxu0 %vm221_vm0, %v193_v16 }
  0x1d   : > { %2407 = vmatprep.mubr.msk.bf16.mxu0 %vm221_vm0, %v194_v17  ;;  %2440 = vmatpush3.bf16.msra.mxu0 %v2638_v30 }
  0x1e   : > { %2441 = vmatprep.subr.bf16.mxu0 %v2744_v27 }
  0x21   : > { %2442 = vmatpush3.bf16.msra.mxu0 %v2639_v25 }
  0x24   : > { %2408 = vmatmul.mubr.msk.bf16.gmra.mrb[8].mxu0 %vm221_vm0, %v195_v22 }
  0x25   : > { %2411 = vmatprep.mubr.msk.bf16.mxu0 %vm221_vm0, %v196_v23 }
  0x2c   : > { %2412 = vmatmul.mubr.msk.bf16.gmra.mrb[12].mxu0 %vm221_vm0, %v197_v26  ;;  %v2640_v26 = vld [vmem:[%s3239_s1 + $0x80] sm:$0xff]  }
  0x2d   : > { %2443 = vmatprep.mubr.msk.bf16.mxu0 %vm2745_vm1, %v2744_v27 }
  0xe7   : > { %v2401_v32 = vpop.f32.mrb[0].mxu0 }
  0xe8   : > { %v289_v33 = vadd.f32 %v2401_v32, %v2189_v31  ;;  %v280_v34 = vpop.f32.mrb[1].mxu0 }
  0xe9   : > { %v281_v35 = vadd.f32 %v2189_v31, %v280_v34  ;;  %v2402_v36 = vpop.f32.mrb[2].mxu0  ;;  %v2201_v34 = vld [vmem:[%s3240_s2 + $0x8] ss:$0 sm:$0xff] }
  0xea   : > { %v292_v37 = vadd.f32 %v2402_v36, %v2189_v31  ;;  %v283_v38 = vpop.f32.mrb[3].mxu0  ;;  %v345_v40 = vmax.f32 %v289_v33, 0.0  ;;  %v2641_v33 = vld [vmem:[%s3239_s1 + $0x88] sm:$0xff]  }
  0xeb   : > { %v284_v39 = vadd.f32 %v2189_v31, %v283_v38  ;;  %v343_v42 = vmax.f32 %v281_v35, 0.0 }
  0xec   : > { %v346_v41 = vmax.f32 %v292_v37, 0.0 }
  0xed   : > { %v344_v43 = vmax.f32 %v284_v39, 0.0 }
  0xee   : > { %v361_v44 = vpack.c.bf16 %v346_v41, %v345_v40  ;;  %v2878_v41 = vld [vmem:[%s3239_s1 + $0x3c] sm:$0xff]  }
  0xef   : > { %v2405_v45 = vpop.f32.mrb[4].mxu0  ;;  %v360_v46 = vpack.c.bf16 %v344_v43, %v343_v42  ;;  %v2207_v42 = vld [vmem:[%s3240_s2 + $0x10] ss:$0 sm:$0xff] }
  0xf0   : > { %v305_v47 = vadd.f32 %v2405_v45, %v2189_v31  ;;  %v296_v48 = vpop.f32.mrb[5].mxu0 }
  0xf1   : > { %v297_v49 = vadd.f32 %v2189_v31, %v296_v48  ;;  %v2406_v50 = vpop.f32.mrb[6].mxu0  ;;  %2416 = vmatpush3.bf16.msra.mxu1 %v360_v46 }
  0xf2   : > { %v308_v51 = vadd.f32 %v2406_v50, %v2189_v31  ;;  %v299_v52 = vpop.f32.mrb[7].mxu0  ;;  %2417 = vmatprep.subr.bf16.mxu1 %v2744_v27  ;;  %v349_v54 = vmax.f32 %v305_v47, 0.0 }
  0xf3   : > { %v300_v53 = vadd.f32 %v2189_v31, %v299_v52  ;;  %v347_v56 = vmax.f32 %v297_v49, 0.0  ;;  %v2894_v52 = vld [vmem:[%s3239_s1 + $0x44] sm:$0xff]  }
  0xf4   : > { %v350_v55 = vmax.f32 %v308_v51, 0.0 }
  0xf5   : > { %v348_v57 = vmax.f32 %v300_v53, 0.0  ;;  %2418 = vmatpush3.bf16.msra.mxu1 %v361_v44  ;;  %v2899_v53 = vld [vmem:[%s3239_s1 + $0x4c] sm:$0xff]  }
  0xf6   : > { %v363_v58 = vpack.c.bf16 %v350_v55, %v349_v54  ;;  %2419 = vmatprep.subr.bf16.mxu1 %v2744_v27  ;;  %v2908_v54 = vld [vmem:[%s3239_s1 + $0x54] sm:$0xff]  }
  0xf7   : > { %v362_v59 = vpack.c.bf16 %v348_v57, %v347_v56  ;;  %v2409_v60 = vpop.f32.mrb[8].mxu0  ;;  %v2296_v57 = vld [vmem:[%s3239_s1 + $0x60] sm:$0xff]  }
  0xf8   : > { %v321_v61 = vadd.f32 %v2409_v60, %v2189_v31  ;;  %v312_v62 = vpop.f32.mrb[9].mxu0  ;;  %v2924_v60 = vunpack.c.h.bf16 %v2296_v57 }
  0xf9   : > { %v313_v63 = vadd.f32 %v2189_v31, %v312_v62  ;;  %v2410_v0 = vpop.f32.mrb[10].mxu0  ;;  %2420 = vmatpush3.bf16.msra.mxu1 %v362_v59  ;;  %v498_v59 = vld [vmem:[%s3239_s1 + $0x5c] ss:$28 sps:$4 sm:$0xff]  }
  0xfa   : > { %v324_v1 = vadd.f32 %v2410_v0, %v2189_v31  ;;  %v315_v2 = vpop.f32.mrb[11].mxu0  ;;  %2421 = vmatprep.subr.bf16.mxu1 %v2744_v27  ;;  %v353_v4 = vmax.f32 %v321_v61, 0.0  ;;  %v2930_v0 = vunpack.c.l.bf16 %v2296_v57 }
  0xfb   : > { %v316_v3 = vadd.f32 %v2189_v31, %v315_v2  ;;  %v351_v6 = vmax.f32 %v313_v63, 0.0  ;;  %v2928_v63 = vunpack.c.l.bf16 %v498_v59 }
  0xfc   : > { %v354_v5 = vmax.f32 %v324_v1, 0.0 }
  0xfd   : > { %v352_v7 = vmax.f32 %v316_v3, 0.0  ;;  %2422 = vmatpush3.bf16.msra.mxu1 %v363_v58  ;;  %v2297_v58 = vld [vmem:[%s3239_s1 + $0x68] sm:$0xff]   ;;  %v2298_v3 = vld [vmem:[%s3239_s1 + $0x70] sm:$0xff]  }
  0xfe   : > { %v365_v8 = vpack.c.bf16 %v354_v5, %v353_v4  ;;  %2423 = vmatprep.subr.bf16.mxu1 %v2744_v27  ;;  %v2926_v61 = vunpack.c.l.bf16 %v2297_v58 }
  0xff   : > { %v364_v9 = vpack.c.bf16 %v352_v7, %v351_v6  ;;  %v2413_v10 = vpop.f32.mrb[12].mxu0 }
 0x100   : > { %v337_v11 = vadd.f32 %v2413_v10, %v2189_v31  ;;  %v328_v12 = vpop.f32.mrb[13].mxu0  ;;  %v2939_v10 = vunpack.c.h.bf16 %v2298_v3 }
 0x101   : > { %v329_v13 = vadd.f32 %v2189_v31, %v328_v12  ;;  %v2414_v14 = vpop.f32.mrb[14].mxu0  ;;  %2424 = vmatpush3.bf16.msra.mxu1 %v364_v9  ;;  %v2941_v12 = vunpack.c.h.bf16 %v2297_v58 }
 0x102   : > { %v340_v15 = vadd.f32 %v2414_v14, %v2189_v31  ;;  %v331_v16 = vpop.f32.mrb[15].mxu0  ;;  %2425 = vmatprep.subr.bf16.mxu1 %v2744_v27  ;;  %v357_v18 = vmax.f32 %v337_v11, 0.0 }
 0x103   : > { %v332_v17 = vadd.f32 %v2189_v31, %v331_v16  ;;  %v355_v20 = vmax.f32 %v329_v13, 0.0  ;;  %v2943_v13 = vunpack.c.h.bf16 %v498_v59 }
 0x104   : > { %v358_v19 = vmax.f32 %v340_v15, 0.0  ;;  %v2946_v15 = vunpack.c.l.bf16 %v2298_v3 }
 0x105   : > { %v356_v21 = vmax.f32 %v332_v17, 0.0  ;;  %2426 = vmatpush3.bf16.msra.mxu1 %v365_v8 }
 0x106   : > { %v367_v22 = vpack.c.bf16 %v358_v19, %v357_v18  ;;  %2427 = vmatprep.subr.bf16.mxu1 %v2744_v27 }
 0x107   : > { %v366_v23 = vpack.c.bf16 %v356_v21, %v355_v20 }
 0x109   : > { %2428 = vmatpush3.bf16.msra.mxu1 %v366_v23 }
 0x10a   : > { %2429 = vmatprep.subr.bf16.mxu1 %v2744_v27 }
 0x10d   : > { %2430 = vmatpush3.bf16.msra.mxu1 %v367_v22 }
 0x10e   : > { %2447 = vmatprep.subr.bf16.mxu1 %v2744_v27 }
 0x110   : > { %2432 = vmatmul.mubr.bf16.vlgmr.msra.gmra.mrb[0].mxu1 %v359_v24 }
 0x111   : > { %2451 = vmatprep.mubr.msk.bf16.mxu1 %vm2745_vm1, %v2744_v27  ;;  %2448 = vmatpush3.bf16.msra.mxu1 %v2640_v26 }
 0x112   : > { %2449 = vmatprep.subr.bf16.mxu1 %v2744_v27 }
 0x115   : > { %2450 = vmatpush3.bf16.msra.mxu1 %v2641_v33 }
 0x1e3   : > { %v402_v28 = vpop.f32.mrb[0].mxu1 }
 0x1e4   : > { %v416_v29 = vpack.c.bf16 %v402_v28, %v402_v28  ;;  %v2433_v30 = vpop.f32.mrb[1].mxu1 }
 0x1e5   : > { %v405_v31 = vpop.f32.mrb[2].mxu1 }
 0x1e6   : > { %v2434_v32 = vpop.f32.mrb[3].mxu1  ;;  %2444 = vmatmul.mubr.msk.bf16.vlgmr.msra.gmra.mrb[16].mxu0 %vm446_vm2, %v416_v29 }
 0x2b9   : > { %v484_v35 = vpop.f32.mrb[16].mxu0 }
 0x2ba   : > { %v2867_v36 = vadd.f32 %v2201_v34, %v484_v35  ;;  %v2445_v37 = vpop.f32.mrb[17].mxu0 }
 0x2bb   : > { %v487_v38 = vpop.f32.mrb[18].mxu0 }
 0x2bc   : > { %v2871_v39 = vpack.c.bf16 %v2867_v36, %v2867_v36  ;;  %v2446_v40 = vpop.f32.mrb[19].mxu0 }
 0x2be   : > { %2452 = vmatmul.mubr.msk.bf16.vlgmr.msra.gmra.mrb[4].mxu1 %vm529_vm3, %v2871_v39 }
 0x2bf   : > { %2457 = vmatprep.mubr.msk.bf16.mxu1 %vm595_vm4, %v2878_v41 }
 0x391   : > { %v567_v43 = vpop.f32.mrb[4].mxu1 }
 0x392   : > { %v568_v44 = vadd.f32 %v2207_v42, %v567_v43  ;;  %v2453_v45 = vpop.f32.mrb[5].mxu1 }
 0x393   : > { %v570_v46 = vpop.f32.mrb[6].mxu1 }
 0x394   : > { %v573_v47 = vmul.f32 0.5, %v568_v44  ;;  %v2454_v48 = vpop.f32.mrb[7].mxu1  ;;  %v2885_v49 = vpack.c.bf16 %v568_v44, %v568_v44 }
 0x396   : > { %v574_v50 = vpack.c.bf16 %v573_v47, %v573_v47  ;;  %699 = vrot.lane.b32.xlu0 %v2885_v49, %s2746_s21 }
 0x398   : > { %2611 = vmatprep.subr.msk.bf16.mxu1 %vm608_vm5, %v574_v50  ;;  %v610_v51 = vsel %vm608_vm5, %v574_v50, 0 }
 0x399   : > { %2456 = vmatpush3.bf16.msra.mxu1 %v610_v51 }
 0x39c   : > { %2458 = vmatmul.mubr.msk.bf16.vlgmr.msra.gmra.mrb[8].mxu1 %vm595_vm4, %v2894_v52 }
 0x39d   : > { %2461 = vmatprep.mubr.msk.bf16.mxu1 %vm595_vm4, %v2899_v53 }
 0x3a4   : > { %2462 = vmatmul.mubr.msk.bf16.gmra.mrb[12].mxu1 %vm595_vm4, %v2908_v54 }
 0x408   : > { %v700_v55 = vpop.permute.xlu0 %699 }
 0x409   : > { %v714_v56 = vsel %vm529_vm3, %v700_v55, 0  ;;  %2612 = vmatprep.subr.msk.bf16.mxu0 %vm529_vm3, %v700_v55 }
 0x40a   : > { %2466 = vmatpush3.bf16.xpose.msra.mxu0 %v714_v56 }
 0x40b   : > { %2485 = vmatprep.subr.bf16.mxu0 %v2744_v27 }
 0x46f   : > { %v2459_v62 = vpop.f32.mrb[8].mxu1 }
 0x470   : > { %v646_v1 = vpop.f32.mrb[9].mxu1  ;;  %v687_v4 = vmul.f32 %v2459_v62, %v2924_v60 }
 0x471   : > { %v2460_v2 = vpop.f32.mrb[10].mxu1  ;;  %v685_v7 = vmul.f32 %v2928_v63, %v646_v1 }
 0x472   : > { %v688_v5 = vmul.f32 %v2460_v2, %v2926_v61  ;;  %v649_v6 = vpop.f32.mrb[11].mxu1 }
 0x473   : > { %v686_v8 = vmul.f32 %v2930_v0, %v649_v6 }
 0x474   : > { %v694_v9 = vpack.c.bf16 %v688_v5, %v687_v4 }
 0x475   : > { %v693_v11 = vpack.c.bf16 %v686_v8, %v685_v7 }
 0x477   : > { %v2463_v14 = vpop.f32.mrb[12].mxu1  ;;  %2467 = vmatprep.mubr.msk.bf16.mxu0 %vm529_vm3, %v693_v11 }
 0x478   : > { %v691_v16 = vmul.f32 %v2463_v14, %v2939_v10  ;;  %v662_v17 = vpop.f32.mrb[13].mxu1  ;;  %2468 = vmatmul.mubr.msk.bf16.vlgmr.msra.gmra.mrb[20].mxu0 %vm529_vm3, %v694_v9 }
 0x479   : > { %v689_v18 = vmul.f32 %v2941_v12, %v662_v17  ;;  %v2464_v19 = vpop.f32.mrb[14].mxu1 }
 0x47a   : > { %v692_v20 = vmul.f32 %v2464_v19, %v2943_v13  ;;  %v665_v21 = vpop.f32.mrb[15].mxu1 }
 0x47b   : > { %v690_v22 = vmul.f32 %v2946_v15, %v665_v21 }
 0x47c   : > { %v696_v23 = vpack.c.bf16 %v692_v20, %v691_v16 }
 0x47d   : > { %v695_v24 = vpack.c.bf16 %v690_v22, %v689_v18 }
 0x47f   : > { %2471 = vmatprep.mubr.msk.bf16.mxu0 %vm529_vm3, %v695_v24 }
 0x480   : > { %2472 = vmatmul.mubr.msk.bf16.gmra.mrb[24].mxu0 %vm529_vm3, %v696_v23 }
 0x481   : > { %2493 = vmatprep.mubr.msk.bf16.mxu0 %vm2745_vm1, %v2744_v27 }
 0x54b   : > { %v2469_v25 = vpop.f32.mrb[20].mxu0 }
 0x54c   : > { %v750_v26 = vpop.f32.mrb[21].mxu0  ;;  %v787_v28 = vsel %vm595_vm4, %v2469_v25, -inf }
 0x54d   : > { %788 = vmax.xlane.f32.xlu1 %v787_v28  ;;  %v2470_v29 = vpop.f32.mrb[22].mxu0  ;;  %v781_v30 = vsel %vm595_vm4, %v750_v26, -inf }
 0x54e   : > { %782 = vmax.xlane.f32.xlu0 %v781_v30  ;;  %v753_v31 = vpop.f32.mrb[23].mxu0  ;;  %v790_v32 = vsel %vm595_vm4, %v2470_v29, -inf }
 0x54f   : > { %v784_v35 = vsel %vm595_vm4, %v753_v31, -inf }
 0x551   : > { %791 = vmax.xlane.f32.xlu1 %v790_v32 }
 0x553   : > { %v2473_v33 = vpop.f32.mrb[24].mxu0 }
 0x554   : > { %v766_v34 = vpop.f32.mrb[25].mxu0  ;;  %v799_v40 = vsel %vm595_vm4, %v2473_v33, -inf }
 0x555   : > { %785 = vmax.xlane.f32.xlu1 %v784_v35  ;;  %v2474_v37 = vpop.f32.mrb[26].mxu0  ;;  %v793_v42 = vsel %vm595_vm4, %v766_v34, -inf }
 0x556   : > { %v769_v38 = vpop.f32.mrb[27].mxu0  ;;  %v802_v44 = vsel %vm595_vm4, %v2474_v37, -inf }
 0x557   : > { %v796_v43 = vsel %vm595_vm4, %v769_v38, -inf }
 0x559   : > { %800 = vmax.xlane.f32.xlu1 %v799_v40 }
 0x55d   : > { %794 = vmax.xlane.f32.xlu1 %v793_v42 }
 0x561   : > { %797 = vmax.xlane.f32.xlu1 %v796_v43 }
 0x565   : > { %803 = vmax.xlane.f32.xlu1 %v802_v44 }
 0x5da   : > { %v789_v45 = vpop.xlane.xlu1 %788 }
 0x5db   : > { %v807_v46 = vsub.f32 %v2469_v25, %v789_v45  ;;  %v783_v47 = vpop.xlane.xlu0 %782 }
 0x5dc   : > { %v805_v48 = vsub.f32 %v750_v26, %v783_v47 }
 0x5dd   : > { %v817_v50 = vmul.f32 1.442695, %v807_v46 }
 0x5de   : > { %v813_v51 = vmul.f32 1.442695, %v805_v48  ;;  %v792_v55 = vpop.xlane.xlu1 %791 }
 0x5df   : > { %2660 = vpow2.f32 %v817_v50  ;;  %v808_v56 = vsub.f32 %v2470_v29, %v792_v55 }
 0x5e0   : > { %2662 = vpow2.f32 %v813_v51 }
 0x5e1   : > { %v819_v59 = vmul.f32 1.442695, %v808_v56 }
 0x5e2   : > { %v786_v57 = vpop.xlane.xlu1 %785 }
 0x5e3   : > { %v806_v58 = vsub.f32 %v753_v31, %v786_v57 }
 0x5e5   : > { %v815_v62 = vmul.f32 1.442695, %v806_v58 }
 0x5e6   : > { %v801_v1 = vpop.xlane.xlu1 %800 }
 0x5e7   : > { %2664 = vpow2.f32 %v815_v62  ;;  %v811_v2 = vsub.f32 %v2473_v33, %v801_v1 }
 0x5e8   : > { %2666 = vpow2.f32 %v819_v59 }
 0x5e9   : > { %v2965_v3 = vpop.eup %2660  ;;  %v825_v4 = vmul.f32 1.442695, %v811_v2 }
 0x5ea   : > { %v2663_v5 = vpop.eup %2662  ;;  %v795_v6 = vpop.xlane.xlu1 %794  ;;  %v835_v7 = vsel %vm595_vm4, %v2965_v3, 0.0 }
 0x5eb   : > { %2668 = vpow2.f32 %v825_v4  ;;  %v809_v8 = vsub.f32 %v766_v34, %v795_v6  ;;  %836 = vadd.xlane.f32.xlu0 %v835_v7  ;;  %v829_v9 = vsel %vm595_vm4, %v2663_v5, 0.0 }
 0x5ec   : > { %830 = vadd.xlane.f32.xlu1 %v829_v9 }
 0x5ed   : > { %v821_v11 = vmul.f32 1.442695, %v809_v8 }
 0x5ee   : > { %v798_v14 = vpop.xlane.xlu1 %797 }
 0x5ef   : > { %2670 = vpow2.f32 %v821_v11  ;;  %v810_v16 = vsub.f32 %v769_v38, %v798_v14 }
 0x5f1   : > { %v2665_v17 = vpop.eup %2664  ;;  %v823_v18 = vmul.f32 1.442695, %v810_v16 }
 0x5f2   : > { %v804_v19 = vpop.xlane.xlu1 %803  ;;  %v832_v20 = vsel %vm595_vm4, %v2665_v17, 0.0  ;;  %v2667_v21 = vpop.eup %2666 }
 0x5f3   : > { %2672 = vpow2.f32 %v823_v18  ;;  %v812_v22 = vsub.f32 %v2474_v37, %v804_v19  ;;  %833 = vadd.xlane.f32.xlu1 %v832_v20  ;;  %v838_v26 = vsel %vm595_vm4, %v2667_v21, 0.0 }
 0x5f5   : > { %v2669_v23 = vpop.eup %2668  ;;  %v827_v24 = vmul.f32 1.442695, %v812_v22 }
 0x5f6   : > { %v847_v25 = vsel %vm595_vm4, %v2669_v23, 0.0 }
 0x5f7   : > { %2674 = vpow2.f32 %v827_v24  ;;  %848 = vadd.xlane.f32.xlu0 %v847_v25  ;;  %839 = vadd.xlane.f32.xlu1 %v838_v26 }
 0x5f9   : > { %v2671_v28 = vpop.eup %2670 }
 0x5fa   : > { %v841_v29 = vsel %vm595_vm4, %v2671_v28, 0.0 }
 0x5fb   : > { %842 = vadd.xlane.f32.xlu0 %v841_v29 }
 0x5fd   : > { %v2673_v30 = vpop.eup %2672 }
 0x5fe   : > { %v844_v31 = vsel %vm595_vm4, %v2673_v30, 0.0 }
 0x5ff   : > { %845 = vadd.xlane.f32.xlu1 %v844_v31 }
 0x601   : > { %v2675_v32 = vpop.eup %2674 }
 0x602   : > { %v850_v33 = vsel %vm595_vm4, %v2675_v32, 0.0 }
 0x603   : > { %851 = vadd.xlane.f32.xlu1 %v850_v33 }
 0x611   : > { %873 = vrot.lane.b32.xlu0 %v2885_v49, %s2747_s9 }
 0x678   : > { %v837_v35 = vpop.xlane.xlu0 %836 }
 0x679   : > { %v831_v34 = vpop.xlane.xlu1 %830 }
 0x67a   : > { %2676 = vrcp.f32 %v831_v34 }
 0x680   : > { %v834_v37 = vpop.xlane.xlu1 %833 }
 0x681   : > { %2678 = vrcp.f32 %v834_v37  ;;  %v2646_v37 = vld [vmem:[%s3239_s1 + $0x90] sm:$0xff]  }
 0x682   : > { %2680 = vrcp.f32 %v837_v35  ;;  %v3002_v35 = vld [vmem:[%s3239_s1 + $0x7c] sm:$0xf] }
 0x684   : > { %v849_v38 = vpop.xlane.xlu0 %848  ;;  %v840_v40 = vpop.xlane.xlu1 %839 }
 0x685   : > { %2682 = vrcp.f32 %v840_v40  ;;  %v2677_v43 = vpop.eup %2676 }
 0x686   : > { %v861_v47 = vmul.f32 %v2677_v43, %v2663_v5 }
 0x688   : > { %v843_v42 = vpop.xlane.xlu0 %842 }
 0x689   : > { %2684 = vrcp.f32 %v843_v42 }
 0x68b   : > { %v2679_v44 = vpop.eup %2678 }
 0x68c   : > { %v874_v45 = vpop.permute.xlu0 %873  ;;  %v846_v46 = vpop.xlane.xlu1 %845  ;;  %v862_v48 = vmul.f32 %v2679_v44, %v2665_v17 }
 0x68d   : > { %v888_v50 = vsel %vm608_vm5, %v874_v45, 0  ;;  %2686 = vrcp.f32 %v846_v46  ;;  %2613 = vmatprep.subr.msk.bf16.mxu1 %vm608_vm5, %v874_v45  ;;  %v2681_v49 = vpop.eup %2680  ;;  %v2228_v46 = vld [vmem:[%s3240_s2 + $0x18] ss:$0 sm:$0xff] }
 0x68e   : > { %2476 = vmatpush3.bf16.msra.mxu1 %v888_v50  ;;  %v869_v51 = vpack.c.bf16 %v862_v48, %v861_v47  ;;  %2688 = vrcp.f32 %v849_v38  ;;  %v863_v57 = vmul.f32 %v2681_v49, %v2965_v3  ;;  %v2647_v38 = vld [vmem:[%s3239_s1 + $0x98] sm:$0xff]  }
 0x68f   : > { %2505 = vmatprep.subr.bf16.mxu1 %v2744_v27  ;;  %v2683_v55 = vpop.eup %2682 }
 0x690   : > { %2477 = vmatprep.mubr.msk.bf16.mxu1 %vm595_vm4, %v869_v51  ;;  %v852_v56 = vpop.xlane.xlu1 %851  ;;  %v864_v58 = vmul.f32 %v2683_v55, %v2667_v21 }
 0x691   : > { %2690 = vrcp.f32 %v852_v56 }
 0x692   : > { %v870_v59 = vpack.c.bf16 %v864_v58, %v863_v57 }
 0x693   : > { %v2685_v62 = vpop.eup %2684 }
 0x694   : > { %2478 = vmatmul.mubr.msk.bf16.vlgmr.msra.gmra.mrb[16].mxu1 %vm595_vm4, %v870_v59  ;;  %v865_v2 = vmul.f32 %v2685_v62, %v2671_v28 }
 0x697   : > { %v2687_v1 = vpop.eup %2686 }
 0x698   : > { %v866_v4 = vmul.f32 %v2687_v1, %v2673_v30  ;;  %v2689_v5 = vpop.eup %2688 }
 0x699   : > { %v867_v8 = vmul.f32 %v2689_v5, %v2669_v23 }
 0x69a   : > { %v871_v6 = vpack.c.bf16 %v866_v4, %v865_v2  ;;  %v2648_v2 = vld [vmem:[%s3239_s1 + $0xa0] sm:$0xff]  }
 0x69b   : > { %v2691_v7 = vpop.eup %2690  ;;  %2506 = vmatpush3.bf16.msra.mxu1 %v2648_v2 }
 0x69c   : > { %2481 = vmatprep.mubr.msk.bf16.mxu1 %vm595_vm4, %v871_v6  ;;  %v868_v9 = vmul.f32 %v2691_v7, %v2675_v32  ;;  %2507 = vmatprep.subr.bf16.mxu1 %v2744_v27 }
 0x69e   : > { %v872_v11 = vpack.c.bf16 %v868_v9, %v867_v8  ;;  %v2232_v8 = vld [vmem:[%s3240_s2 + $0x20] ss:$0 sm:$0xff] }
 0x6a0   : > { %2482 = vmatmul.mubr.msk.bf16.gmra.mrb[20].mxu1 %vm595_vm4, %v872_v11  ;;  %v2233_v11 = vld [vmem:[%s3240_s2 + $0x28] ss:$0 sm:$0xff] }
 0x6a1   : > { %2509 = vmatprep.mubr.msk.bf16.mxu1 %vm2745_vm1, %v2744_v27 }
 0x767   : > { %v2479_v3 = vpop.f32.mrb[16].mxu1 }
 0x768   : > { %v924_v14 = vpop.f32.mrb[17].mxu1  ;;  %v957_v17 = vmul.f32 %v2479_v3, %v2924_v60 }
 0x769   : > { %v2480_v16 = vpop.f32.mrb[18].mxu1  ;;  %v955_v20 = vmul.f32 %v924_v14, %v2928_v63 }
 0x76a   : > { %v958_v18 = vmul.f32 %v2480_v16, %v2926_v61  ;;  %v927_v19 = vpop.f32.mrb[19].mxu1 }
 0x76b   : > { %v956_v21 = vmul.f32 %v2930_v0, %v927_v19 }
 0x76c   : > { %v964_v22 = vpack.c.bf16 %v958_v18, %v957_v17  ;;  %v2650_v17 = vld [vmem:[%s3239_s1 + $0xb0] sm:$0xff]  }
 0x76d   : > { %v963_v23 = vpack.c.bf16 %v956_v21, %v955_v20  ;;  %v2234_v18 = vld [vmem:[%s3240_s2 + $0x30] ss:$0 sm:$0xff] }
 0x76f   : > { %2486 = vmatpush3.bf16.msra.mxu0 %v963_v23 }
 0x770   : > { %2487 = vmatprep.subr.bf16.mxu0 %v2744_v27 }
 0x773   : > { %v2483_v24 = vpop.f32.mrb[20].mxu1  ;;  %2488 = vmatpush3.bf16.msra.mxu0 %v964_v22 }
 0x774   : > { %v940_v25 = vpop.f32.mrb[21].mxu1  ;;  %2489 = vmatprep.subr.bf16.mxu0 %v2744_v27  ;;  %v961_v28 = vmul.f32 %v2483_v24, %v2939_v10 }
 0x775   : > { %v2484_v26 = vpop.f32.mrb[22].mxu1  ;;  %v959_v31 = vmul.f32 %v2941_v12, %v940_v25 }
 0x776   : > { %v962_v29 = vmul.f32 %v2484_v26, %v2943_v13  ;;  %v943_v30 = vpop.f32.mrb[23].mxu1  ;;  %v2238_v26 = vld [vmem:[%s3240_s2 + $0x38] ss:$0 sm:$0xff] }
 0x777   : > { %v960_v32 = vmul.f32 %v2946_v15, %v943_v30 }
 0x778   : > { %v966_v33 = vpack.c.bf16 %v962_v29, %v961_v28 }
 0x779   : > { %v965_v34 = vpack.c.bf16 %v960_v32, %v959_v31 }
 0x77b   : > { %2490 = vmatpush3.bf16.msra.mxu0 %v965_v34 }
 0x77c   : > { %2491 = vmatprep.subr.bf16.mxu0 %v2744_v27 }
 0x77f   : > { %2492 = vmatpush3.bf16.msra.mxu0 %v966_v33 }
 0x780   : > { %2497 = vmatprep.subr.bf16.mxu0 %v2744_v27 }
 0x782   : > { %2494 = vmatmul.mubr.msk.bf16.vlgmr.msra.gmra.mrb[28].mxu0 %vm446_vm2, %v3002_v35 }
 0x783   : > { %2498 = vmatpush3.bf16.msra.mxu0 %v2646_v37  ;;  %2501 = vmatprep.mubr.msk.bf16.mxu0 %vm2745_vm1, %v2744_v27 }
 0x784   : > { %2499 = vmatprep.subr.bf16.mxu0 %v2744_v27 }
 0x787   : > { %2500 = vmatpush3.bf16.msra.mxu0 %v2647_v38 }
 0x788   : > { %2513 = vmatprep.subr.bf16.mxu0 %v2744_v27 }
 0x855   : > { %v1004_v40 = vpop.f32.mrb[28].mxu0 }
 0x856   : > { %v1014_v42 = vpack.c.bf16 %v1004_v40, %v1004_v40  ;;  %v2495_v43 = vpop.f32.mrb[29].mxu0 }
 0x857   : > { %v1007_v44 = vpop.f32.mrb[30].mxu0 }
 0x858   : > { %v2496_v45 = vpop.f32.mrb[31].mxu0  ;;  %2502 = vmatmul.mubr.msk.bf16.vlgmr.msra.gmra.mrb[32].mxu0 %vm529_vm3, %v1014_v42  ;;  %v2652_v44 = vld [vmem:[%s3239_s1 + $0xc0] sm:$0xff]  }
 0x859   : > { %2515 = vmatprep.mubr.msk.bf16.mxu0 %vm2745_vm1, %v2744_v27  ;;  %2514 = vmatpush3.bf16.msra.mxu0 %v2650_v17 }
 0x92b   : > { %v1069_v47 = vpop.f32.mrb[32].mxu0 }
 0x92c   : > { %v1070_v48 = vadd.f32 %v2228_v46, %v1069_v47  ;;  %v2503_v50 = vpop.f32.mrb[33].mxu0 }
 0x92d   : > { %v1072_v49 = vpop.f32.mrb[34].mxu0  ;;  %v2241_v50 = vld [vmem:[%s3240_s2 + $0x40] ss:$0 sm:$0xff] }
 0x92e   : > { %v2504_v51 = vpop.f32.mrb[35].mxu0  ;;  %v1075_v55 = vadd.f32 %v1070_v48, %v2867_v36  ;;  %v2649_v36 = vld [vmem:[%s3239_s1 + $0xa8] sm:$0xff]  }
 0x92f   : > { %2508 = vmatpush3.bf16.msra.mxu1 %v2649_v36  ;;  %v2242_v51 = vld [vmem:[%s3240_s2 + $0x48] ss:$0 sm:$0xff] }
 0x930   : > { %v1076_v56 = vsel %vm529_vm3, %v1075_v55, 0.0  ;;  %2519 = vmatprep.subr.bf16.mxu1 %v2744_v27 }
 0x931   : > { %1077 = vadd.xlane.f32.xlu1 %v1076_v56 }
 0x9be   : > { %v1078_v57 = vpop.xlane.xlu1 %1077 }
 0x9bf   : > { %v1080_v58 = vmul.f32 0.03125, %v1078_v57 }
 0x9c1   : > { %v1081_v59 = vsub.f32 %v1075_v55, %v1080_v58  ;;  %v2243_v58 = vld [vmem:[%s3240_s2 + $0x50] ss:$0 sm:$0xff] }
 0x9c3   : > { %v1082_v62 = vmul.f32 %v1081_v59, %v1081_v59 }
 0x9c5   : > { %v1083_v1 = vsel %vm529_vm3, %v1082_v62, 0.0 }
 0x9c6   : > { %1084 = vadd.xlane.f32.xlu1 %v1083_v1 }
 0xa53   : > { %v1085_v4 = vpop.xlane.xlu1 %1084 }
 0xa54   : > { %v1086_v5 = vmul.f32 0.03125, %v1085_v4 }
 0xa56   : > { %v1087_v6 = vadd.f32 1e-05, %v1086_v5 }
 0xa58   : > { %2692 = vrsqrt.f32 %v1087_v6 }
 0xa62   : > { %v2693_v7 = vpop.eup %2692 }
 0xa63   : > { %v1089_v9 = vmul.f32 %v2693_v7, %v1081_v59 }
 0xa65   : > { %v1095_v3 = vmul.f32 %v2232_v8, %v1089_v9 }
 0xa67   : > { %v1101_v14 = vadd.f32 %v2233_v11, %v1095_v3 }
 0xa69   : > { %v1106_v16 = vpack.c.bf16 %v1101_v14, %v1101_v14 }
 0xa6b   : > { %2510 = vmatmul.mubr.msk.bf16.vlgmr.msra.gmra.mrb[24].mxu1 %vm529_vm3, %v1106_v16 }
 0xa6c   : > { %2523 = vmatprep.mubr.msk.bf16.mxu1 %vm2745_vm1, %v2744_v27 }
 0xb3e   : > { %v1161_v19 = vpop.f32.mrb[24].mxu1 }
 0xb3f   : > { %v1162_v20 = vadd.f32 %v2234_v18, %v1161_v19  ;;  %v2511_v21 = vpop.f32.mrb[25].mxu1 }
 0xb40   : > { %v1164_v22 = vpop.f32.mrb[26].mxu1 }
 0xb41   : > { %v1167_v23 = vmax.f32 %v1162_v20, 0.0  ;;  %v2512_v24 = vpop.f32.mrb[27].mxu1 }
 0xb43   : > { %v1170_v25 = vpack.c.bf16 %v1167_v23, %v1167_v23 }
 0xb45   : > { %2516 = vmatmul.mubr.msk.bf16.vlgmr.msra.gmra.mrb[36].mxu0 %vm1182_vm6, %v1170_v25 }
 0xb46   : > { %2529 = vmatprep.mubr.msk.bf16.mxu0 %vm595_vm4, %v2878_v41  ;;  %v2651_v41 = vld [vmem:[%s3239_s1 + $0xb8] sm:$0xff]  }
 0xb47   : > { %2520 = vmatpush3.bf16.msra.mxu1 %v2651_v41 }
 0xb48   : > { %2521 = vmatprep.subr.bf16.mxu1 %v2744_v27 }
 0xb4b   : > { %2522 = vmatpush3.bf16.msra.mxu1 %v2652_v44 }
 0xc18   : > { %v1220_v28 = vpop.f32.mrb[36].mxu0 }
 0xc19   : > { %v1221_v29 = vadd.f32 %v2238_v26, %v1220_v28  ;;  %v2517_v30 = vpop.f32.mrb[37].mxu0 }
 0xc1a   : > { %v1223_v31 = vpop.f32.mrb[38].mxu0 }
 0xc1b   : > { %v2518_v32 = vpop.f32.mrb[39].mxu0  ;;  %v1226_v33 = vadd.f32 %v1221_v29, %v1101_v14 }
 0xc1d   : > { %v1227_v34 = vsel %vm529_vm3, %v1226_v33, 0.0 }
 0xc1e   : > { %1228 = vadd.xlane.f32.xlu1 %v1227_v34 }
 0xcab   : > { %v1229_v37 = vpop.xlane.xlu1 %1228 }
 0xcac   : > { %v1230_v38 = vmul.f32 0.03125, %v1229_v37 }
 0xcae   : > { %v1231_v40 = vsub.f32 %v1226_v33, %v1230_v38 }
 0xcb0   : > { %v1232_v42 = vmul.f32 %v1231_v40, %v1231_v40 }
 0xcb2   : > { %v1233_v43 = vsel %vm529_vm3, %v1232_v42, 0.0 }
 0xcb3   : > { %1234 = vadd.xlane.f32.xlu1 %v1233_v43 }
 0xd40   : > { %v1235_v45 = vpop.xlane.xlu1 %1234 }
 0xd41   : > { %v1236_v46 = vmul.f32 0.03125, %v1235_v45 }
 0xd43   : > { %v1237_v47 = vadd.f32 1e-05, %v1236_v46 }
 0xd45   : > { %2694 = vrsqrt.f32 %v1237_v47 }
 0xd4f   : > { %v2695_v48 = vpop.eup %2694 }
 0xd50   : > { %v1239_v49 = vmul.f32 %v2695_v48, %v1231_v40 }
 0xd52   : > { %v1245_v55 = vmul.f32 %v2241_v50, %v1239_v49 }
 0xd54   : > { %v3070_v56 = vadd.f32 %v2242_v51, %v1245_v55 }
 0xd56   : > { %v1256_v57 = vpack.c.bf16 %v3070_v56, %v3070_v56 }
 0xd58   : > { %2524 = vmatmul.mubr.msk.bf16.vlgmr.msra.gmra.mrb[28].mxu1 %vm529_vm3, %v1256_v57 }
 0xe2b   : > { %v1311_v59 = vpop.f32.mrb[28].mxu1 }
 0xe2c   : > { %v1312_v62 = vadd.f32 %v2243_v58, %v1311_v59  ;;  %v2525_v1 = vpop.f32.mrb[29].mxu1 }
 0xe2d   : > { %v1314_v2 = vpop.f32.mrb[30].mxu1 }
 0xe2e   : > { %v1317_v36 = vmul.f32 0.5, %v1312_v62  ;;  %v3078_v4 = vpack.c.bf16 %v1312_v62, %v1312_v62  ;;  %v2526_v5 = vpop.f32.mrb[31].mxu1 }
 0xe30   : > { %v1318_v6 = vpack.c.bf16 %v1317_v36, %v1317_v36  ;;  %1401 = vrot.lane.b32.xlu1 %v3078_v4, %s2746_s21 }
 0xe32   : > { %2614 = vmatprep.subr.msk.bf16.mxu0 %vm608_vm5, %v1318_v6  ;;  %v1320_v7 = vsel %vm608_vm5, %v1318_v6, 0 }
 0xe33   : > { %2528 = vmatpush3.bf16.msra.mxu0 %v1320_v7 }
 0xe36   : > { %2530 = vmatmul.mubr.msk.bf16.vlgmr.msra.gmra.mrb[40].mxu0 %vm595_vm4, %v2894_v52 }
 0xe37   : > { %2533 = vmatprep.mubr.msk.bf16.mxu0 %vm595_vm4, %v2899_v53 }
 0xe3e   : > { %2534 = vmatmul.mubr.msk.bf16.gmra.mrb[44].mxu0 %vm595_vm4, %v2908_v54 }
 0xea2   : > { %v1402_v8 = vpop.permute.xlu1 %1401 }
 0xea3   : > { %v1416_v9 = vsel %vm529_vm3, %v1402_v8, 0  ;;  %2615 = vmatprep.subr.msk.bf16.mxu1 %vm529_vm3, %v1402_v8 }
 0xea4   : > { %2538 = vmatpush3.bf16.xpose.msra.mxu1 %v1416_v9 }
 0xea5   : > { %2557 = vmatprep.subr.bf16.mxu1 %v2744_v27 }
 0xf09   : > { %v2531_v11 = vpop.f32.mrb[40].mxu0 }
 0xf0a   : > { %v1356_v3 = vpop.f32.mrb[41].mxu0  ;;  %v1389_v16 = vmul.f32 %v2531_v11, %v2924_v60 }
 0xf0b   : > { %v2532_v14 = vpop.f32.mrb[42].mxu0  ;;  %v1387_v53 = vmul.f32 %v1356_v3, %v2928_v63 }
 0xf0c   : > { %v1390_v52 = vmul.f32 %v2532_v14, %v2926_v61  ;;  %v1359_v17 = vpop.f32.mrb[43].mxu0 }
 0xf0d   : > { %v1388_v54 = vmul.f32 %v2930_v0, %v1359_v17 }
 0xf0e   : > { %v1396_v18 = vpack.c.bf16 %v1390_v52, %v1389_v16 }
 0xf0f   : > { %v1395_v19 = vpack.c.bf16 %v1388_v54, %v1387_v53 }
 0xf11   : > { %v2535_v20 = vpop.f32.mrb[44].mxu0  ;;  %2539 = vmatprep.mubr.msk.bf16.mxu1 %vm529_vm3, %v1395_v19 }
 0xf12   : > { %v1393_v21 = vmul.f32 %v2535_v20, %v2939_v10  ;;  %v1372_v22 = vpop.f32.mrb[45].mxu0  ;;  %2540 = vmatmul.mubr.msk.bf16.vlgmr.msra.gmra.mrb[32].mxu1 %vm529_vm3, %v1396_v18 }
 0xf13   : > { %v1391_v23 = vmul.f32 %v2941_v12, %v1372_v22  ;;  %v2536_v24 = vpop.f32.mrb[46].mxu0 }
 0xf14   : > { %v1394_v25 = vmul.f32 %v2536_v24, %v2943_v13  ;;  %v1375_v26 = vpop.f32.mrb[47].mxu0 }
 0xf15   : > { %v1392_v28 = vmul.f32 %v2946_v15, %v1375_v26 }
 0xf16   : > { %v1398_v29 = vpack.c.bf16 %v1394_v25, %v1393_v21 }
 0xf17   : > { %v1397_v30 = vpack.c.bf16 %v1392_v28, %v1391_v23 }
 0xf19   : > { %2543 = vmatprep.mubr.msk.bf16.mxu1 %vm529_vm3, %v1397_v30 }
 0xf1a   : > { %2544 = vmatmul.mubr.msk.bf16.gmra.mrb[36].mxu1 %vm529_vm3, %v1398_v29 }
 0xf1b   : > { %2565 = vmatprep.mubr.msk.bf16.mxu1 %vm2745_vm1, %v2744_v27 }
 0xfe5   : > { %v2541_v31 = vpop.f32.mrb[32].mxu1 }
 0xfe6   : > { %v1452_v32 = vpop.f32.mrb[33].mxu1  ;;  %v1489_v40 = vsel %vm595_vm4, %v2541_v31, -inf }
 0xfe7   : > { %v2542_v33 = vpop.f32.mrb[34].mxu1  ;;  %v1483_v34 = vsel %vm595_vm4, %v1452_v32, -inf }
 0xfe8   : > { %1484 = vmax.xlane.f32.xlu0 %v1483_v34  ;;  %v1455_v37 = vpop.f32.mrb[35].mxu1  ;;  %v1492_v44 = vsel %vm595_vm4, %v2542_v33, -inf }
 0xfe9   : > { %v1486_v38 = vsel %vm595_vm4, %v1455_v37, -inf }
 0xfea   : > { %1487 = vmax.xlane.f32.xlu1 %v1486_v38 }
 0xfec   : > { %1490 = vmax.xlane.f32.xlu0 %v1489_v40 }
 0xfed   : > { %v2545_v42 = vpop.f32.mrb[36].mxu1 }
 0xfee   : > { %v1468_v43 = vpop.f32.mrb[37].mxu1  ;;  %v1501_v50 = vsel %vm595_vm4, %v2545_v42, -inf }
 0xfef   : > { %v2546_v41 = vpop.f32.mrb[38].mxu1  ;;  %v1495_v47 = vsel %vm595_vm4, %v1468_v43, -inf }
 0xff0   : > { %1493 = vmax.xlane.f32.xlu0 %v1492_v44  ;;  %v1471_v45 = vpop.f32.mrb[39].mxu1  ;;  %v1504_v46 = vsel %vm595_vm4, %v2546_v41, -inf }
 0xff1   : > { %1505 = vmax.xlane.f32.xlu1 %v1504_v46  ;;  %v1498_v48 = vsel %vm595_vm4, %v1471_v45, -inf }
 0xff4   : > { %1496 = vmax.xlane.f32.xlu0 %v1495_v47 }
 0xff8   : > { %1499 = vmax.xlane.f32.xlu0 %v1498_v48 }
 0xffc   : > { %1502 = vmax.xlane.f32.xlu0 %v1501_v50 }
0x1075   : > { %v1485_v49 = vpop.xlane.xlu0 %1484 }
0x1076   : > { %v1507_v55 = vsub.f32 %v1452_v32, %v1485_v49 }
0x1077   : > { %v1488_v51 = vpop.xlane.xlu1 %1487 }
0x1078   : > { %v1508_v57 = vsub.f32 %v1455_v37, %v1488_v51  ;;  %v1515_v1 = vmul.f32 1.442695, %v1507_v55 }
0x1079   : > { %v1491_v58 = vpop.xlane.xlu0 %1490 }
0x107a   : > { %v1517_v59 = vmul.f32 1.442695, %v1508_v57  ;;  %v1509_v62 = vsub.f32 %v2541_v31, %v1491_v58 }
0x107c   : > { %2696 = vpow2.f32 %v1517_v59  ;;  %v1519_v2 = vmul.f32 1.442695, %v1509_v62 }
0x107d   : > { %v1494_v36 = vpop.xlane.xlu0 %1493 }
0x107e   : > { %2698 = vpow2.f32 %v1519_v2  ;;  %v1510_v5 = vsub.f32 %v2542_v33, %v1494_v36  ;;  %v1506_v7 = vpop.xlane.xlu1 %1505 }
0x107f   : > { %2700 = vpow2.f32 %v1515_v1  ;;  %v1514_v9 = vsub.f32 %v2546_v41, %v1506_v7 }
0x1080   : > { %v1521_v6 = vmul.f32 1.442695, %v1510_v5 }
0x1081   : > { %v1497_v8 = vpop.xlane.xlu0 %1496  ;;  %v1529_v17 = vmul.f32 1.442695, %v1514_v9 }
0x1082   : > { %2702 = vpow2.f32 %v1521_v6  ;;  %v1511_v53 = vsub.f32 %v1468_v43, %v1497_v8 }
0x1084   : > { %v1523_v23 = vmul.f32 1.442695, %v1511_v53 }
0x1085   : > { %v1500_v11 = vpop.xlane.xlu0 %1499 }
0x1086   : > { %v2697_v3 = vpop.eup %2696  ;;  %v1512_v14 = vsub.f32 %v1471_v45, %v1500_v11 }
0x1087   : > { %v1534_v16 = vsel %vm595_vm4, %v2697_v3, 0.0 }
0x1088   : > { %v2699_v52 = vpop.eup %2698  ;;  %v1525_v54 = vmul.f32 1.442695, %v1512_v14  ;;  %1535 = vadd.xlane.f32.xlu1 %v1534_v16 }
0x1089   : > { %v1503_v18 = vpop.xlane.xlu0 %1502  ;;  %v1537_v19 = vsel %vm595_vm4, %v2699_v52, 0.0  ;;  %v2701_v20 = vpop.eup %2700 }
0x108a   : > { %2704 = vpow2.f32 %v1525_v54  ;;  %v1513_v21 = vsub.f32 %v2545_v42, %v1503_v18  ;;  %1538 = vadd.xlane.f32.xlu0 %v1537_v19  ;;  %v1531_v26 = vsel %vm595_vm4, %v2701_v20, 0.0 }
0x108b   : > { %2706 = vpow2.f32 %v1529_v17 }
0x108c   : > { %v2703_v22 = vpop.eup %2702  ;;  %v1527_v24 = vmul.f32 1.442695, %v1513_v21 }
0x108d   : > { %v1540_v25 = vsel %vm595_vm4, %v2703_v22, 0.0 }
0x108e   : > { %2708 = vpow2.f32 %v1527_v24  ;;  %1541 = vadd.xlane.f32.xlu1 %v1540_v25  ;;  %1532 = vadd.xlane.f32.xlu0 %v1531_v26 }
0x108f   : > { %2710 = vpow2.f32 %v1523_v23 }
0x1094   : > { %v2705_v28 = vpop.eup %2704 }
0x1095   : > { %v1546_v29 = vsel %vm595_vm4, %v2705_v28, 0.0  ;;  %v2707_v30 = vpop.eup %2706 }
0x1096   : > { %1547 = vadd.xlane.f32.xlu1 %v1546_v29  ;;  %v1552_v32 = vsel %vm595_vm4, %v2707_v30, 0.0 }
0x1098   : > { %v2709_v31 = vpop.eup %2708 }
0x1099   : > { %v1549_v33 = vsel %vm595_vm4, %v2709_v31, 0.0  ;;  %v2711_v34 = vpop.eup %2710 }
0x109a   : > { %1553 = vadd.xlane.f32.xlu1 %v1552_v32  ;;  %1550 = vadd.xlane.f32.xlu0 %v1549_v33  ;;  %v1543_v37 = vsel %vm595_vm4, %v2711_v34, 0.0  ;;  %v2260_v32 = vld [vmem:[%s3240_s2 + $0x58] ss:$0 sm:$0xff] }
0x109e   : > { %1544 = vadd.xlane.f32.xlu0 %v1543_v37 }
0x10b4   : > { %1575 = vrot.lane.b32.xlu0 %v3078_v4, %s2747_s9 }
0x1115   : > { %v1536_v40 = vpop.xlane.xlu1 %1535 }
0x1116   : > { %2712 = vrcp.f32 %v1536_v40 }
0x1117   : > { %v1539_v38 = vpop.xlane.xlu0 %1538 }
0x111b   : > { %v1533_v42 = vpop.xlane.xlu0 %1532  ;;  %v1542_v43 = vpop.xlane.xlu1 %1541 }
0x111c   : > { %2714 = vrcp.f32 %v1533_v42 }
0x111d   : > { %2716 = vrcp.f32 %v1542_v43 }
0x111e   : > { %2718 = vrcp.f32 %v1539_v38 }
0x1120   : > { %v2713_v44 = vpop.eup %2712 }
0x1121   : > { %v1564_v50 = vmul.f32 %v2713_v44, %v2697_v3 }
0x1123   : > { %v1548_v41 = vpop.xlane.xlu1 %1547 }
0x1126   : > { %v2715_v45 = vpop.eup %2714 }
0x1127   : > { %v1554_v46 = vpop.xlane.xlu1 %1553  ;;  %v1551_v47 = vpop.xlane.xlu0 %1550  ;;  %v1563_v48 = vmul.f32 %v2715_v45, %v2701_v20 }
0x1128   : > { %2720 = vrcp.f32 %v1554_v46  ;;  %v2717_v4 = vpop.eup %2716 }
0x1129   : > { %2722 = vrcp.f32 %v1551_v47  ;;  %v1571_v49 = vpack.c.bf16 %v1564_v50, %v1563_v48  ;;  %v2719_v55 = vpop.eup %2718  ;;  %v1566_v57 = vmul.f32 %v2717_v4, %v2703_v22  ;;  %v2655_v48 = vld [vmem:[%s3239_s1 + $0xd8] sm:$0xff]  }
0x112a   : > { %2724 = vrcp.f32 %v1548_v41  ;;  %v1565_v59 = vmul.f32 %v2719_v55, %v2699_v52  ;;  %v2264_v55 = vld [vmem:[%s3240_s2 + $0x60] ss:$0 sm:$0xff] }
0x112b   : > { %v1545_v51 = vpop.xlane.xlu0 %1544  ;;  %2549 = vmatprep.mubr.msk.bf16.mxu0 %vm595_vm4, %v1571_v49 }
0x112c   : > { %2726 = vrcp.f32 %v1545_v51  ;;  %v1572_v2 = vpack.c.bf16 %v1566_v57, %v1565_v59 }
0x112f   : > { %v1576_v58 = vpop.permute.xlu0 %1575 }
0x1130   : > { %v1590_v62 = vsel %vm608_vm5, %v1576_v58, 0  ;;  %2616 = vmatprep.subr.msk.bf16.mxu0 %vm608_vm5, %v1576_v58  ;;  %v2265_v58 = vld [vmem:[%s3240_s2 + $0x68] ss:$0 sm:$0xff] }
0x1131   : > { %2548 = vmatpush3.bf16.msra.mxu0 %v1590_v62 }
0x1132   : > { %v2721_v1 = vpop.eup %2720  ;;  %2577 = vmatprep.subr.bf16.mxu0 %v2744_v27 }
0x1133   : > { %v2723_v36 = vpop.eup %2722  ;;  %v1570_v8 = vmul.f32 %v2721_v1, %v2707_v30 }
0x1134   : > { %v2725_v5 = vpop.eup %2724  ;;  %2550 = vmatmul.mubr.msk.bf16.vlgmr.msra.gmra.mrb[48].mxu0 %vm595_vm4, %v1572_v2  ;;  %v1569_v7 = vmul.f32 %v2723_v36, %v2709_v31  ;;  %v2657_v2 = vld [vmem:[%s3239_s1 + $0xe8] sm:$0xff]   ;;  %v2266_v36 = vld [vmem:[%s3240_s2 + $0x70] ss:$0 sm:$0xff] }
0x1135   : > { %v1568_v11 = vmul.f32 %v2725_v5, %v2705_v28  ;;  %2578 = vmatpush3.bf16.msra.mxu0 %v2655_v48 }
0x1136   : > { %v2727_v6 = vpop.eup %2726  ;;  %v1574_v14 = vpack.c.bf16 %v1570_v8, %v1569_v7  ;;  %2579 = vmatprep.subr.bf16.mxu0 %v2744_v27 }
0x1137   : > { %v1567_v9 = vmul.f32 %v2727_v6, %v2711_v34 }
0x1139   : > { %v1573_v3 = vpack.c.bf16 %v1568_v11, %v1567_v9 }
0x113b   : > { %2553 = vmatprep.mubr.msk.bf16.mxu0 %vm595_vm4, %v1573_v3 }
0x113c   : > { %2554 = vmatmul.mubr.msk.bf16.gmra.mrb[52].mxu0 %vm595_vm4, %v1574_v14  ;;  %v2270_v14 = vld [vmem:[%s3240_s2 + $0x78] ss:$0 sm:$0xff] }
0x113d   : > { %2581 = vmatprep.mubr.msk.bf16.mxu0 %vm2745_vm1, %v2744_v27 }
0x1207   : > { %v2551_v16 = vpop.f32.mrb[48].mxu0 }
0x1208   : > { %v1626_v52 = vpop.f32.mrb[49].mxu0  ;;  %v1659_v53 = vmul.f32 %v2551_v16, %v2924_v60 }
0x1209   : > { %v2552_v17 = vpop.f32.mrb[50].mxu0  ;;  %v1657_v19 = vmul.f32 %v1626_v52, %v2928_v63 }
0x120a   : > { %v1660_v54 = vmul.f32 %v2552_v17, %v2926_v61  ;;  %v1629_v18 = vpop.f32.mrb[51].mxu0 }
0x120b   : > { %v1658_v20 = vmul.f32 %v2930_v0, %v1629_v18 }
0x120c   : > { %v1666_v21 = vpack.c.bf16 %v1660_v54, %v1659_v53 }
0x120d   : > { %v1665_v22 = vpack.c.bf16 %v1658_v20, %v1657_v19 }
0x120f   : > { %v2555_v23 = vpop.f32.mrb[52].mxu0  ;;  %2558 = vmatpush3.bf16.msra.mxu1 %v1665_v22 }
0x1210   : > { %v1642_v24 = vpop.f32.mrb[53].mxu0  ;;  %2559 = vmatprep.subr.bf16.mxu1 %v2744_v27  ;;  %v1663_v26 = vmul.f32 %v2555_v23, %v2939_v10  ;;  %v2653_v10 = vld [vmem:[%s3239_s1 + $0xc8] sm:$0xff]  }
0x1211   : > { %v2556_v25 = vpop.f32.mrb[54].mxu0  ;;  %v1661_v61 = vmul.f32 %v2941_v12, %v1642_v24  ;;  %v2654_v12 = vld [vmem:[%s3239_s1 + $0xd0] sm:$0xff]  }
0x1212   : > { %v1664_v28 = vmul.f32 %v2556_v25, %v2943_v13  ;;  %v1645_v60 = vpop.f32.mrb[55].mxu0  ;;  %v2658_v25 = vld [vmem:[%s3239_s1 + $0xf0] sm:$0xff]  }
0x1213   : > { %v1662_v29 = vmul.f32 %v2946_v15, %v1645_v60  ;;  %2560 = vmatpush3.bf16.msra.mxu1 %v1666_v21 }
0x1214   : > { %v1668_v63 = vpack.c.bf16 %v1664_v28, %v1663_v26  ;;  %2561 = vmatprep.subr.bf16.mxu1 %v2744_v27  ;;  %v2659_v26 = vld [vmem:[%s3239_s1 + $0xf8] sm:$0xff]  }
0x1215   : > { %v1667_v0 = vpack.c.bf16 %v1662_v29, %v1661_v61 }
0x1217   : > { %2562 = vmatpush3.bf16.msra.mxu1 %v1667_v0 }
0x1218   : > { %2563 = vmatprep.subr.bf16.mxu1 %v2744_v27 }
0x121b   : > { %2564 = vmatpush3.bf16.msra.mxu1 %v1668_v63  ;;  %v2273_v63 = vld [vmem:[%s3240_s2 + $0x80] ss:$0 sm:$0xff] }
0x121c   : > { %2569 = vmatprep.subr.bf16.mxu1 %v2744_v27 }
0x121e   : > { %2566 = vmatmul.mubr.msk.bf16.vlgmr.msra.gmra.mrb[40].mxu1 %vm446_vm2, %v3002_v35 }
0x121f   : > { %2570 = vmatpush3.bf16.msra.mxu1 %v2653_v10  ;;  %2573 = vmatprep.mubr.msk.bf16.mxu1 %vm2745_vm1, %v2744_v27  ;;  %v2274_v10 = vld [vmem:[%s3240_s2 + $0x88] ss:$0 sm:$0xff] }
0x1220   : > { %2571 = vmatprep.subr.bf16.mxu1 %v2744_v27 }
0x1223   : > { %2572 = vmatpush3.bf16.msra.mxu1 %v2654_v12 }
0x1224   : > { %2585 = vmatprep.subr.bf16.mxu1 %v2744_v27 }
0x12f1   : > { %v1703_v13 = vpop.f32.mrb[40].mxu1 }
0x12f2   : > { %v1713_v15 = vpack.c.bf16 %v1703_v13, %v1703_v13  ;;  %v2567_v30 = vpop.f32.mrb[41].mxu1 }
0x12f3   : > { %v1706_v31 = vpop.f32.mrb[42].mxu1  ;;  %v2085_v30 = vsel %vm608_vm5, %v2871_v39, 0 }
0x12f4   : > { %2574 = vmatmul.mubr.msk.bf16.vlgmr.msra.gmra.mrb[44].mxu1 %vm529_vm3, %v1713_v15  ;;  %v2568_v35 = vpop.f32.mrb[43].mxu1  ;;  %v2017_v31 = vld [vmem:[%s3240_s2 + $0x98] sm:$0x1] }
0x12f5   : > { %2587 = vmatprep.mubr.msk.bf16.mxu1 %vm2745_vm1, %v2744_v27  ;;  %2586 = vmatpush3.bf16.msra.mxu1 %v2657_v2  ;;  %v2748_v35 = vmov 0  }
0x12f6   : > { %2599 = vmatprep.subr.bf16.mxu1 %v2744_v27  ;;  %2631 = vset.pattern.permute.xlu1 %v2748_v35 }
0x12f7   : > { %2632 = vset.pattern.permute.xlu0 %v2748_v35 }
0x13c7   : > { %v1768_v33 = vpop.f32.mrb[44].mxu1 }
0x13c8   : > { %v1769_v34 = vadd.f32 %v2260_v32, %v1768_v33  ;;  %v2575_v37 = vpop.f32.mrb[45].mxu1  ;;  %v2275_v32 = vld [vmem:[%s3240_s2 + $0x90] ss:$0 sm:$0xff] }
0x13c9   : > { %v1771_v38 = vpop.f32.mrb[46].mxu1 }
0x13ca   : > { %v1774_v40 = vadd.f32 %v1769_v34, %v3070_v56  ;;  %v2576_v42 = vpop.f32.mrb[47].mxu1  ;;  %v2656_v56 = vld [vmem:[%s3239_s1 + $0xe0] sm:$0xff]  }
0x13cb   : > { %2580 = vmatpush3.bf16.msra.mxu0 %v2656_v56 }
0x13cc   : > { %v1775_v43 = vsel %vm529_vm3, %v1774_v40, 0.0  ;;  %2591 = vmatprep.subr.bf16.mxu0 %v2744_v27 }
0x13cd   : > { %1776 = vadd.xlane.f32.xlu1 %v1775_v43  ;;  %v2015_v43 = vld [vmem:[%s3239_s1 + $0x100] sm:$0x1] }
0x145a   : > { %v1777_v41 = vpop.xlane.xlu1 %1776 }
0x145b   : > { %v1778_v44 = vmul.f32 0.03125, %v1777_v41 }
0x145d   : > { %v1779_v45 = vsub.f32 %v1774_v40, %v1778_v44 }
0x145f   : > { %v1780_v46 = vmul.f32 %v1779_v45, %v1779_v45 }
0x1461   : > { %v1781_v47 = vsel %vm529_vm3, %v1780_v46, 0.0 }
0x1462   : > { %1782 = vadd.xlane.f32.xlu1 %v1781_v47 }
0x14ef   : > { %v1783_v50 = vpop.xlane.xlu1 %1782 }
0x14f0   : > { %v1784_v49 = vmul.f32 0.03125, %v1783_v50 }
0x14f2   : > { %v1785_v4 = vadd.f32 1e-05, %v1784_v49 }
0x14f4   : > { %2728 = vrsqrt.f32 %v1785_v4 }
0x14fe   : > { %v2729_v51 = vpop.eup %2728 }
0x14ff   : > { %v1787_v57 = vmul.f32 %v2729_v51, %v1779_v45 }
0x1501   : > { %v1793_v59 = vmul.f32 %v2264_v55, %v1787_v57 }
0x1503   : > { %v1799_v62 = vadd.f32 %v2265_v58, %v1793_v59 }
0x1505   : > { %v1804_v1 = vpack.c.bf16 %v1799_v62, %v1799_v62 }
0x1507   : > { %2582 = vmatmul.mubr.msk.bf16.vlgmr.msra.gmra.mrb[56].mxu0 %vm529_vm3, %v1804_v1 }
0x1508   : > { %2595 = vmatprep.mubr.msk.bf16.mxu0 %vm2745_vm1, %v2744_v27  ;;  %2592 = vmatpush3.bf16.msra.mxu0 %v2658_v25 }
0x1509   : > { %2593 = vmatprep.subr.bf16.mxu0 %v2744_v27 }
0x150c   : > { %2594 = vmatpush3.bf16.msra.mxu0 %v2659_v26 }
0x150d   : > { %2605 = vmatprep.subr.bf16.mxu0 %v2744_v27 }
0x15da   : > { %v1859_v5 = vpop.f32.mrb[56].mxu0 }
0x15db   : > { %v1860_v6 = vadd.f32 %v2266_v36, %v1859_v5  ;;  %v2583_v7 = vpop.f32.mrb[57].mxu0 }
0x15dc   : > { %v1862_v8 = vpop.f32.mrb[58].mxu0 }
0x15dd   : > { %v1865_v9 = vmax.f32 %v1860_v6, 0.0  ;;  %v2584_v11 = vpop.f32.mrb[59].mxu0 }
0x15df   : > { %v1868_v3 = vpack.c.bf16 %v1865_v9, %v1865_v9 }
0x15e1   : > { %2588 = vmatmul.mubr.msk.bf16.vlgmr.msra.gmra.mrb[48].mxu1 %vm1182_vm6, %v1868_v3 }
0x15e2   : > { %2601 = vmatprep.mubr.msk.bf16.mxu1 %vm2745_vm1, %v2744_v27 }
0x16b4   : > { %v1917_v16 = vpop.f32.mrb[48].mxu1 }
0x16b5   : > { %v1918_v52 = vadd.f32 %v2270_v14, %v1917_v16  ;;  %v2589_v17 = vpop.f32.mrb[49].mxu1 }
0x16b6   : > { %v1920_v53 = vpop.f32.mrb[50].mxu1 }
0x16b7   : > { %v2590_v54 = vpop.f32.mrb[51].mxu1  ;;  %v1923_v18 = vadd.f32 %v1918_v52, %v1799_v62 }
0x16b9   : > { %v1924_v19 = vsel %vm529_vm3, %v1923_v18, 0.0 }
0x16ba   : > { %1925 = vadd.xlane.f32.xlu1 %v1924_v19 }
0x1747   : > { %v1926_v20 = vpop.xlane.xlu1 %1925 }
0x1748   : > { %v1927_v21 = vmul.f32 0.03125, %v1926_v20 }
0x174a   : > { %v1928_v22 = vsub.f32 %v1923_v18, %v1927_v21 }
0x174c   : > { %v1929_v23 = vmul.f32 %v1928_v22, %v1928_v22 }
0x174e   : > { %v1930_v24 = vsel %vm529_vm3, %v1929_v23, 0.0 }
0x174f   : > { %1931 = vadd.xlane.f32.xlu1 %v1930_v24 }
0x1760   : > { %2020 = vperm.xlu1 %2631, %v2017_v31  }
0x17dc   : > { %v1932_v28 = vpop.xlane.xlu1 %1931 }
0x17dd   : > { %v1933_v60 = vmul.f32 0.03125, %v1932_v28 }
0x17df   : > { %v1934_v61 = vadd.f32 1e-05, %v1933_v60 }
0x17e0   : > { %v2021_v41 = vpop.permute.xlu1 %2020 }
0x17e1   : > { %2730 = vrsqrt.f32 %v1934_v61 }
0x17eb   : > { %v2731_v29 = vpop.eup %2730 }
0x17ec   : > { %v1936_v0 = vmul.f32 %v2731_v29, %v1928_v22 }
0x17ee   : > { %v1942_v12 = vmul.f32 %v2273_v63, %v1936_v0 }
0x17f0   : > { %v1948_v13 = vadd.f32 %v2274_v10, %v1942_v12 }
0x17f2   : > { %v1953_v15 = vpack.c.bf16 %v1948_v13, %v1948_v13 }
0x17f4   : > { %2596 = vmatmul.mubr.msk.bf16.vlgmr.msra.gmra.mrb[60].mxu0 %vm529_vm3, %v1953_v15 }
0x17f5   : > { %2606 = vmatpush3.bf16.msra.mxu0 %v2085_v30  ;;  %2607 = vmatprep.mubr.msk.bf16.mxu0 %vm2745_vm1, %v2744_v27 }
0x18c7   : > { %v2008_v33 = vpop.f32.mrb[60].mxu0 }
0x18c8   : > { %v2009_v34 = vadd.f32 %v2275_v32, %v2008_v33  ;;  %v2597_v37 = vpop.f32.mrb[61].mxu0 }
0x18c9   : > { %v2011_v39 = vpop.f32.mrb[62].mxu0 }
0x18ca   : > { %v2014_v38 = vmax.f32 %v2009_v34, 0.0  ;;  %v2598_v40 = vpop.f32.mrb[63].mxu0 }
0x18cc   : > { %v2016_v42 = vpack.c.bf16 %v2014_v38, %v2014_v38 }
0x18ce   : > { %v2027_v27 = vsel %vm1182_vm6, %v2016_v42, 0 }
0x18cf   : > { %2600 = vmatpush3.bf16.xpose.msra.mxu1 %v2027_v27 }
0x18d6   : > { %2602 = vmatmul.mubr.msk.bf16.vlgmr.msra.gmra.mrb[52].mxu1 %vm1182_vm6, %v2015_v43 }
0x19a9   : > { %v2063_v44 = vpop.f32.mrb[52].mxu1 }
0x19aa   : > { %v2064_v45 = vadd.f32 %v2063_v44, %v2021_v41  ;;  %v2603_v46 = vpop.f32.mrb[53].mxu1 }
0x19ab   : > { %v2066_v47 = vpop.f32.mrb[54].mxu1 }
0x19ac   : > { %v2070_v48 = vsel %vm2069_vm7, %v2064_v45, -inf  ;;  %v2604_v56 = vpop.f32.mrb[55].mxu1 }
0x19ad   : > { %2071 = vmax.xlane.f32.xlu0 %v2070_v48 }
0x1a3a   : > { %v2072_v50 = vpop.xlane.xlu0 %2071 }
0x1a3b   : > { %v2073_v49 = vsub.f32 %v2064_v45, %v2072_v50 }
0x1a3d   : > { %v2074_v4 = vmul.f32 1.442695, %v2073_v49 }
0x1a3f   : > { %2732 = vpow2.f32 %v2074_v4 }
0x1a49   : > { %v2733_v51 = vpop.eup %2732 }
0x1a4a   : > { %v2076_v55 = vsel %vm2069_vm7, %v2733_v51, 0.0 }
0x1a4b   : > { %2077 = vadd.xlane.f32.xlu1 %v2076_v55 }
0x1ad8   : > { %v2078_v57 = vpop.xlane.xlu1 %2077 }
0x1ad9   : > { %2734 = vrcp.f32 %v2078_v57 }
0x1ae3   : > { %v2735_v58 = vpop.eup %2734 }
0x1ae4   : > { %v2080_v59 = vmul.f32 %v2735_v58, %v2733_v51 }
0x1ae6   : > { %2128 = vrot.lane.b32.xlu0 %v2080_v59, %s2749_s29  ;;  %v2081_v62 = vpack.c.bf16 %v2080_v59, %v2080_v59 }
0x1ae8   : > { %2608 = vmatmul.mubr.msk.bf16.vlgmr.msra.gmra.mrb[64].mxu0 %vm595_vm4, %v2081_v62 }
0x1b58   : > { %v2129_v1 = vpop.permute.xlu0 %2128 }
0x1bbb   : > { %v2121_v2 = vpop.f32.mrb[64].mxu0 }
0x1bbc   : > { %v2131_v36 = vsel %vm529_vm3, %v2121_v2, %v2129_v1  ;;  %v2609_v5 = vpop.f32.mrb[65].mxu0 }
0x1bbd   : > { %v2133_v6 = vsel %vm2132_vm8, %v2131_v36, 0.0  ;;  %v2124_v7 = vpop.f32.mrb[66].mxu0 }
0x1bbe   : > { %2134 = vst [vmem:[%s166_s5] sm:$0x1] %v2133_v6  ;;  %v2610_v8 = vpop.f32.mrb[67].mxu0 }
0x1bbf PF: > { %s13_s12 = sadd.s32 1, %s2742_s12  }
0x1bc0   : > { %p10_p4 = scmp.ge.s32.totalorder %s13_s12, 4  }
0x1bc2   :  { %12 = sbr.rel (!%p10_p4) target bundleno = 1 (0x1), region = 62 }

</bundles_post_ra>
